<compile_context>
chip_gen: v5e
topology: v5e:2x2
jax: 0.10.0
libtpu: 0.0.40
codegen_flags: <defaults>
</compile_context>

<pallas_src>
import functools

import jax
import jax.numpy as jnp
from jax.experimental import pallas as pl
from jax.experimental.pallas import tpu as pltpu


def s2vt_kernel(
    feats_ref,        # (TB, T_dec, D_f)  raw frame features (first T_enc used)
    emb_words_ref,    # (TB, T_dec, E_w)  decoder input word embedding per step
    w_ef_ref, b_ef_ref,              # (D_f, E_f), (1, E_f)
    w_eo_ref, b_eo_ref,              # (T_enc, H, H), (1, H)
    w_ih_enc_f_ref,                  # (E_f, 4H)  frame half of encoder w_ih
    w_hh_enc_ref, b_enc_ref,         # (H, 4H), (1, 4H)
    w_ih_dec_w_ref,                  # (E_w, 4H)  word half of decoder w_ih
    w_hh_dec_ref, b_dec_ref,         # (H, 4H), (1, 4H)
    w_do_h_ref, w_do_enc_ref, w_do_w_ref, b_do_ref,   # (H,H),(H,H),(E_w,H),(1,H)
    w_l_ref, b_l_ref,                # (H, V), (1, V)
    out_ref,                         # (TB, T_dec, V)   decoder logits
    *, T_enc, T_dec, H, mm_dtype,
):
    f32 = jnp.float32
    TB = feats_ref.shape[0]
    D_f = feats_ref.shape[2]
    E_w = emb_words_ref.shape[2]
    V = out_ref.shape[2]

    # ---------------- hoisted weight loads (cast to matmul dtype once) -------
    def wload(ref):
        return ref[...].astype(mm_dtype)

    w_ef = wload(w_ef_ref)
    w_eo = wload(w_eo_ref)                 # (T_enc, H, H)
    w_ih_enc_f = wload(w_ih_enc_f_ref)
    w_hh_enc = wload(w_hh_enc_ref)
    w_ih_dec_w = wload(w_ih_dec_w_ref)
    w_hh_dec = wload(w_hh_dec_ref)
    w_do_h = wload(w_do_h_ref)
    w_do_enc = wload(w_do_enc_ref)
    w_do_w = wload(w_do_w_ref)
    w_l = wload(w_l_ref)

    b_ef = b_ef_ref[...]
    b_eo = b_eo_ref[...]
    b_enc = b_enc_ref[...]
    b_dec = b_dec_ref[...]
    b_do = b_do_ref[...]
    b_l = b_l_ref[...]

    def mdot(a, b):
        # activations cast per call, weights pre-cast; fp32 accumulation.
        return jnp.dot(a.astype(mm_dtype), b, preferred_element_type=f32)

    def lstm_step(gates, c):
        i = jax.nn.sigmoid(gates[:, 0 * H:1 * H])
        f = jax.nn.sigmoid(gates[:, 1 * H:2 * H])
        g = jnp.tanh(gates[:, 2 * H:3 * H])
        o = jax.nn.sigmoid(gates[:, 3 * H:4 * H])
        c_new = f * c + i * g
        return o * jnp.tanh(c_new), c_new

    # --------------------------------- encoder -------------------------------
    # Batched (all time steps at once) frame embedding + input-gate contribution
    # (bias b_enc folded in); per-step loop only keeps the recurrent matmul.
    x_f = feats_ref[...][:, :T_enc, :].reshape(TB * T_enc, D_f)
    ef_all = mdot(x_f, w_ef) + b_ef                           # (TB*T_enc, E_f)
    gx_all = (mdot(ef_all, w_ih_enc_f) + b_enc).reshape(TB, T_enc, 4 * H)

    h = jnp.zeros((TB, H), f32)
    c = jnp.zeros((TB, H), f32)
    # embed_output_encoder(cat_t h_t) == sum_t h_t @ W_eo[t] + b_eo, so
    # accumulate it per step; rows [0:TB] carry the h part, [TB:2TB] the c part.
    acc = jnp.zeros((2 * TB, H), f32)
    for t in range(T_enc):
        gates = gx_all[:, t, :] + mdot(h, w_hh_enc)
        h, c = lstm_step(gates, c)
        hc = jnp.concatenate([h, c], axis=0)                  # cheap sublane concat
        acc = acc + mdot(hc, w_eo[t])                         # fused h/c @ W_eo_t

    enc_h = acc[:TB] + b_eo
    enc_c = acc[TB:] + b_eo

    # ------------------------- decoder (teacher forcing) ---------------------
    # Batched word-side contributions for all steps: LSTM input gates (+ b_dec)
    # and the deepout word term.
    x_w = emb_words_ref[...].reshape(TB * T_dec, E_w)
    gw_all = (mdot(x_w, w_ih_dec_w) + b_dec).reshape(TB, T_dec, 4 * H)
    dw_all = mdot(x_w, w_do_w).reshape(TB, T_dec, H)
    # deepout contribution of enc_h (+ bias) is loop-invariant -> hoisted.
    do_const = mdot(enc_h, w_do_enc) + b_do

    h_d = enc_h
    c_d = enc_c
    h_steps = []
    for t in range(T_dec):
        gates = gw_all[:, t, :] + mdot(h_d, w_hh_dec)
        h_lstm, c_d = lstm_step(gates, c_d)
        h_d = jnp.tanh(mdot(h_lstm, w_do_h) + do_const + dw_all[:, t, :])
        h_steps.append(h_d[:, None, :])

    # Batched vocabulary projection (stream w_l through the MXU once) and a
    # single output store instead of T_dec tiny masked stores.
    h_all = jnp.concatenate(h_steps, axis=1).reshape(TB * T_dec, H)
    logits = mdot(h_all, w_l) + b_l                           # (TB*T_dec, V)
    out_ref[...] = logits.reshape(TB, T_dec, V)
    # TODO(synk): inference branch (labels is None) with argmax feedback and
    # in-kernel embedding gather is not implemented.


def s2vt_forward_pallas(params, feats, labels, *, T_enc, T_dec, E_f, E_w, H, V,
                        batch_block=1, mm_dtype=jnp.bfloat16):
    B, T_f, D_f = feats.shape
    # The module reshapes feats to T_dec frames and the encoder reads the first
    # T_enc of them; guard against silent OOB reads (no runtime check in VMEM).
    assert T_enc <= T_f, "encoder reads the first T_enc frames of feats"
    assert B % batch_block == 0
    TB = batch_block

    # Glue: embedding lookups (pure gathers) stay in plain JAX.
    # Decoder input word at step t: <start> for t=0, labels[:, t-1] otherwise.
    start_ids = jnp.zeros((B,), jnp.int32)                       # id of '<start>'
    emb_start = jnp.take(params["w_emb"], start_ids, axis=0)     # (B, E_w)
    emb_prev = jnp.take(params["w_emb"], labels[:, :T_dec - 1], axis=0)
    emb_words = jnp.concatenate([emb_start[:, None, :], emb_prev], axis=1)

    # Glue: split / reshape weights once outside the kernel.
    w_eo3 = params["w_eo"].reshape(T_enc, H, H)
    w_ih_enc_f = params["w_ih_enc"][:E_f]             # frame half (word half hits zeros)
    w_ih_dec_w = params["w_ih_dec"][E_f:E_f + E_w]    # word half (frame half hits zeros)
    w_do_h = params["w_do"][:H]
    w_do_enc = params["w_do"][H:2 * H]
    w_do_w = params["w_do"][2 * H:2 * H + E_w]

    kernel = functools.partial(
        s2vt_kernel, T_enc=T_enc, T_dec=T_dec, H=H, mm_dtype=mm_dtype)

    batched = [feats, emb_words]
    weights = [
        params["w_ef"], params["b_ef"],
        w_eo3, params["b_eo"],
        w_ih_enc_f, params["w_hh_enc"], params["b_enc"],
        w_ih_dec_w, params["w_hh_dec"], params["b_dec"],
        w_do_h, w_do_enc, w_do_w, params["b_do"],
        params["w_l"], params["b_l"],
    ]

    def batch_spec(x):
        return pl.BlockSpec((TB,) + x.shape[1:], lambda b: (b, 0, 0))

    def const_spec(x):
        nd = x.ndim
        return pl.BlockSpec(x.shape, lambda b, _nd=nd: (0,) * _nd)

    in_specs = [batch_spec(x) for x in batched] + [const_spec(w) for w in weights]
    out_spec = pl.BlockSpec((TB, T_dec, V), lambda b: (b, 0, 0))

    return pl.pallas_call(
        kernel,
        out_shape=jax.ShapeDtypeStruct((B, T_dec, V), jnp.float32),
        grid=(B // TB,),
        in_specs=in_specs,
        out_specs=out_spec,
        compiler_params=pltpu.CompilerParams(
            dimension_semantics=("parallel",),        # megacore sharding on v7x
            vmem_limit_bytes=32 * 1024 * 1024),       # above v5e's 16 MiB default
    )(*batched, *weights)


def s2vt_forward_reference(params, feats, labels, *, T_enc, T_dec, E_f, E_w, H, V):
    """Pure-JAX mirror of the PyTorch forward (teacher forcing)."""
    B, _, D_f = feats.shape
    ef = feats.reshape(-1, D_f) @ params["w_ef"] + params["b_ef"]
    ef = ef.reshape(B, T_dec, E_f)

    def lstm(x, h, c, w_ih, w_hh, b):
        gates = x @ w_ih + h @ w_hh + b
        i = jax.nn.sigmoid(gates[:, :H])
        f = jax.nn.sigmoid(gates[:, H:2 * H])
        g = jnp.tanh(gates[:, 2 * H:3 * H])
        o = jax.nn.sigmoid(gates[:, 3 * H:])
        c = f * c + i * g
        return o * jnp.tanh(c), c

    pad_w = jnp.zeros((B, E_w), jnp.float32)
    h = jnp.zeros((B, H), jnp.float32)
    c = jnp.zeros((B, H), jnp.float32)
    hs, cs = [], []
    for t in range(T_enc):
        x = jnp.concatenate([ef[:, t, :], pad_w], axis=1)
        h, c = lstm(x, h, c, params["w_ih_enc"], params["w_hh_enc"], params["b_enc"])
        hs.append(h)
        cs.append(c)
    enc_h = jnp.concatenate(hs, axis=1) @ params["w_eo"] + params["b_eo"]
    enc_c = jnp.concatenate(cs, axis=1) @ params["w_eo"] + params["b_eo"]

    pad_f = jnp.zeros((B, E_f), jnp.float32)
    emb_word = jnp.take(params["w_emb"], jnp.zeros((B,), jnp.int32), axis=0)
    emb_labels = jnp.take(params["w_emb"], labels, axis=0)
    h, c = enc_h, enc_c
    outs = []
    for t in range(T_dec):
        x = jnp.concatenate([pad_f, emb_word], axis=1)
        h_lstm, c = lstm(x, h, c, params["w_ih_dec"], params["w_hh_dec"], params["b_dec"])
        h = jnp.tanh(jnp.concatenate([h_lstm, enc_h, emb_word], axis=1)
                     @ params["w_do"] + params["b_do"])
        outs.append(h @ params["w_l"] + params["b_l"])
        emb_word = emb_labels[:, t, :]
    return jnp.stack(outs, axis=1)


def make_params(key, *, D_f, E_f, E_w, H, T_enc, V):
    ks = jax.random.split(key, 16)
    n = lambda k, shape, s=0.1: (s * jax.random.normal(k, shape)).astype(jnp.float32)
    return {
        "w_ef": n(ks[0], (D_f, E_f)),            "b_ef": n(ks[1], (1, E_f)),
        "w_eo": n(ks[2], (T_enc * H, H)),        "b_eo": n(ks[3], (1, H)),
        "w_emb": n(ks[4], (V, E_w)),
        "w_ih_enc": n(ks[5], (E_f + E_w, 4 * H)),
        "w_hh_enc": n(ks[6], (H, 4 * H)),        "b_enc": n(ks[7], (1, 4 * H)),
        "w_ih_dec": n(ks[8], (E_f + E_w, 4 * H)),
        "w_hh_dec": n(ks[9], (H, 4 * H)),        "b_dec": n(ks[10], (1, 4 * H)),
        "w_do": n(ks[11], (2 * H + E_w, H)),     "b_do": n(ks[12], (1, H)),
        "w_l": n(ks[13], (H, V)),                "b_l": n(ks[14], (1, V)),
    }


if __name__ == "__main__":
    # small shapes consistent with the module
    B, T_enc, T_dec = 2, 4, 6
    D_f, E_f, E_w, H, V = 64, 32, 16, 32, 40

    key = jax.random.PRNGKey(0)
    k_p, k_x, k_lbl = jax.random.split(key, 3)
    params = make_params(k_p, D_f=D_f, E_f=E_f, E_w=E_w, H=H, T_enc=T_enc, V=V)
    feats = jax.random.normal(k_x, (B, T_dec, D_f), jnp.float32)
    labels = jax.random.randint(k_lbl, (B, T_dec), 0, V, dtype=jnp.int32)

    dims = dict(T_enc=T_enc, T_dec=T_dec, E_f=E_f, E_w=E_w, H=H, V=V)
    ref = jax.block_until_ready(s2vt_forward_reference(params, feats, labels, **dims))

    # fp32 matmul-operand path: tight correctness check.
    out_f32 = jax.block_until_ready(
        s2vt_forward_pallas(params, feats, labels, mm_dtype=jnp.float32, **dims))
    assert out_f32.shape == (B, T_dec, V)
    assert jnp.allclose(out_f32, ref, rtol=5e-3, atol=5e-3), (
        float(jnp.max(jnp.abs(out_f32 - ref))))

    # bf16 matmul-operand path (the v6e/v7x perf configuration): looser check,
    # recurrent state and accumulation stay fp32.
    out_bf16 = jax.block_until_ready(
        s2vt_forward_pallas(params, feats, labels, mm_dtype=jnp.bfloat16, **dims))
    assert out_bf16.shape == (B, T_dec, V)
    assert jnp.allclose(out_bf16, ref, rtol=5e-2, atol=5e-2), (
        float(jnp.max(jnp.abs(out_bf16 - ref))))

    print("KERNEL_OK")
</pallas_src>

<mosaic_0001>
module attributes {stable_mosaic.version = 11 : i64} {
  func.func @s2vt_kernel(%arg0: i32, %arg1: memref<1x6x64xf32, #tpu.memory_space<vmem>>, %arg2: memref<1x6x16xf32, #tpu.memory_space<vmem>>, %arg3: memref<64x32xf32, #tpu.memory_space<vmem>>, %arg4: memref<1x32xf32, #tpu.memory_space<vmem>>, %arg5: memref<4x32x32xf32, #tpu.memory_space<vmem>>, %arg6: memref<1x32xf32, #tpu.memory_space<vmem>>, %arg7: memref<32x128xf32, #tpu.memory_space<vmem>>, %arg8: memref<32x128xf32, #tpu.memory_space<vmem>>, %arg9: memref<1x128xf32, #tpu.memory_space<vmem>>, %arg10: memref<16x128xf32, #tpu.memory_space<vmem>>, %arg11: memref<32x128xf32, #tpu.memory_space<vmem>>, %arg12: memref<1x128xf32, #tpu.memory_space<vmem>>, %arg13: memref<32x32xf32, #tpu.memory_space<vmem>>, %arg14: memref<32x32xf32, #tpu.memory_space<vmem>>, %arg15: memref<16x32xf32, #tpu.memory_space<vmem>>, %arg16: memref<1x32xf32, #tpu.memory_space<vmem>>, %arg17: memref<32x40xf32, #tpu.memory_space<vmem>>, %arg18: memref<1x40xf32, #tpu.memory_space<vmem>>, %arg19: memref<1x6x40xf32, #tpu.memory_space<vmem>>) attributes {dimension_semantics = [#tpu.dimension_semantics<parallel>], iteration_bounds = array<i64: 2>, scalar_prefetch = 0 : i64, scratch_operands = 0 : i64, tpu.core_type = #tpu.core_type<tc>, window_params = [{transform_indices = @transform_0, window_bounds = array<i64: 1, 6, 64>}, {transform_indices = @transform_1, window_bounds = array<i64: 1, 6, 16>}, {pipeline_mode = #tpu.pipeline_mode<synchronous>, transform_indices = @transform_2, window_bounds = array<i64: 64, 32>}, {pipeline_mode = #tpu.pipeline_mode<synchronous>, transform_indices = @transform_3, window_bounds = array<i64: 1, 32>}, {pipeline_mode = #tpu.pipeline_mode<synchronous>, transform_indices = @transform_4, window_bounds = array<i64: 4, 32, 32>}, {pipeline_mode = #tpu.pipeline_mode<synchronous>, transform_indices = @transform_5, window_bounds = array<i64: 1, 32>}, {pipeline_mode = #tpu.pipeline_mode<synchronous>, transform_indices = @transform_6, window_bounds = array<i64: 32, 128>}, {pipeline_mode = #tpu.pipeline_mode<synchronous>, transform_indices = @transform_7, window_bounds = array<i64: 32, 128>}, {pipeline_mode = #tpu.pipeline_mode<synchronous>, transform_indices = @transform_8, window_bounds = array<i64: 1, 128>}, {pipeline_mode = #tpu.pipeline_mode<synchronous>, transform_indices = @transform_9, window_bounds = array<i64: 16, 128>}, {pipeline_mode = #tpu.pipeline_mode<synchronous>, transform_indices = @transform_10, window_bounds = array<i64: 32, 128>}, {pipeline_mode = #tpu.pipeline_mode<synchronous>, transform_indices = @transform_11, window_bounds = array<i64: 1, 128>}, {pipeline_mode = #tpu.pipeline_mode<synchronous>, transform_indices = @transform_12, window_bounds = array<i64: 32, 32>}, {pipeline_mode = #tpu.pipeline_mode<synchronous>, transform_indices = @transform_13, window_bounds = array<i64: 32, 32>}, {pipeline_mode = #tpu.pipeline_mode<synchronous>, transform_indices = @transform_14, window_bounds = array<i64: 16, 32>}, {pipeline_mode = #tpu.pipeline_mode<synchronous>, transform_indices = @transform_15, window_bounds = array<i64: 1, 32>}, {pipeline_mode = #tpu.pipeline_mode<synchronous>, transform_indices = @transform_16, window_bounds = array<i64: 32, 40>}, {pipeline_mode = #tpu.pipeline_mode<synchronous>, transform_indices = @transform_17, window_bounds = array<i64: 1, 40>}, {transform_indices = @transform_18, window_bounds = array<i64: 1, 6, 40>}]} {
    %c0 = arith.constant 0 : index
    %c0_0 = arith.constant 0 : index
    %0 = vector.load %arg3[%c0, %c0_0] : memref<64x32xf32, #tpu.memory_space<vmem>>, vector<64x32xf32>
    %c0_1 = arith.constant 0 : index
    %c0_2 = arith.constant 0 : index
    %c0_3 = arith.constant 0 : index
    %1 = vector.load %arg5[%c0_1, %c0_2, %c0_3] : memref<4x32x32xf32, #tpu.memory_space<vmem>>, vector<4x32x32xf32>
    %c0_4 = arith.constant 0 : index
    %c0_5 = arith.constant 0 : index
    %2 = vector.load %arg7[%c0_4, %c0_5] : memref<32x128xf32, #tpu.memory_space<vmem>>, vector<32x128xf32>
    %c0_6 = arith.constant 0 : index
    %c0_7 = arith.constant 0 : index
    %3 = vector.load %arg8[%c0_6, %c0_7] : memref<32x128xf32, #tpu.memory_space<vmem>>, vector<32x128xf32>
    %c0_8 = arith.constant 0 : index
    %c0_9 = arith.constant 0 : index
    %4 = vector.load %arg10[%c0_8, %c0_9] : memref<16x128xf32, #tpu.memory_space<vmem>>, vector<16x128xf32>
    %c0_10 = arith.constant 0 : index
    %c0_11 = arith.constant 0 : index
    %5 = vector.load %arg11[%c0_10, %c0_11] : memref<32x128xf32, #tpu.memory_space<vmem>>, vector<32x128xf32>
    %c0_12 = arith.constant 0 : index
    %c0_13 = arith.constant 0 : index
    %6 = vector.load %arg13[%c0_12, %c0_13] : memref<32x32xf32, #tpu.memory_space<vmem>>, vector<32x32xf32>
    %c0_14 = arith.constant 0 : index
    %c0_15 = arith.constant 0 : index
    %7 = vector.load %arg14[%c0_14, %c0_15] : memref<32x32xf32, #tpu.memory_space<vmem>>, vector<32x32xf32>
    %c0_16 = arith.constant 0 : index
    %c0_17 = arith.constant 0 : index
    %8 = vector.load %arg15[%c0_16, %c0_17] : memref<16x32xf32, #tpu.memory_space<vmem>>, vector<16x32xf32>
    %c0_18 = arith.constant 0 : index
    %c0_19 = arith.constant 0 : index
    %9 = vector.load %arg17[%c0_18, %c0_19] : memref<32x40xf32, #tpu.memory_space<vmem>>, vector<32x40xf32>
    %c0_20 = arith.constant 0 : index
    %c0_21 = arith.constant 0 : index
    %10 = vector.load %arg4[%c0_20, %c0_21] : memref<1x32xf32, #tpu.memory_space<vmem>>, vector<1x32xf32>
    %c0_22 = arith.constant 0 : index
    %c0_23 = arith.constant 0 : index
    %11 = vector.load %arg6[%c0_22, %c0_23] : memref<1x32xf32, #tpu.memory_space<vmem>>, vector<1x32xf32>
    %c0_24 = arith.constant 0 : index
    %c0_25 = arith.constant 0 : index
    %12 = vector.load %arg9[%c0_24, %c0_25] : memref<1x128xf32, #tpu.memory_space<vmem>>, vector<1x128xf32>
    %c0_26 = arith.constant 0 : index
    %c0_27 = arith.constant 0 : index
    %13 = vector.load %arg12[%c0_26, %c0_27] : memref<1x128xf32, #tpu.memory_space<vmem>>, vector<1x128xf32>
    %c0_28 = arith.constant 0 : index
    %c0_29 = arith.constant 0 : index
    %14 = vector.load %arg16[%c0_28, %c0_29] : memref<1x32xf32, #tpu.memory_space<vmem>>, vector<1x32xf32>
    %c0_30 = arith.constant 0 : index
    %c0_31 = arith.constant 0 : index
    %15 = vector.load %arg18[%c0_30, %c0_31] : memref<1x40xf32, #tpu.memory_space<vmem>>, vector<1x40xf32>
    %c0_32 = arith.constant 0 : index
    %c0_33 = arith.constant 0 : index
    %c0_34 = arith.constant 0 : index
    %16 = vector.load %arg1[%c0_32, %c0_33, %c0_34] : memref<1x6x64xf32, #tpu.memory_space<vmem>>, vector<1x6x64xf32>
    %17 = vector.extract_strided_slice %16 {offsets = [0, 0, 0], sizes = [1, 4, 64], strides = [1, 1, 1]} : vector<1x6x64xf32> to vector<1x4x64xf32>
    %18 = vector.shape_cast %17 : vector<1x4x64xf32> to vector<4x64xf32>
    %cst = arith.constant dense<0.000000e+00> : vector<4x32xf32>
    %19 = tpu.matmul %18, %0, %cst {dimension_numbers = #tpu.dot_dimension_numbers<[1], [0], [0], [1], [0, 0, 1, 1], [], []>} : vector<4x64xf32>, vector<64x32xf32>, vector<4x32xf32> -> vector<4x32xf32>
    %20 = vector.broadcast %10 : vector<1x32xf32> to vector<4x32xf32>
    %21 = arith.addf %19, %20 : vector<4x32xf32>
    %cst_35 = arith.constant dense<0.000000e+00> : vector<4x128xf32>
    %22 = tpu.matmul %21, %2, %cst_35 {dimension_numbers = #tpu.dot_dimension_numbers<[1], [0], [0], [1], [0, 0, 1, 1], [], []>} : vector<4x32xf32>, vector<32x128xf32>, vector<4x128xf32> -> vector<4x128xf32>
    %23 = vector.broadcast %12 : vector<1x128xf32> to vector<4x128xf32>
    %24 = arith.addf %22, %23 : vector<4x128xf32>
    %25 = vector.shape_cast %24 : vector<4x128xf32> to vector<1x4x128xf32>
    %cst_36 = arith.constant 0.000000e+00 : f32
    %26 = vector.broadcast %cst_36 : f32 to vector<1x32xf32>
    %cst_37 = arith.constant 0.000000e+00 : f32
    %27 = vector.broadcast %cst_37 : f32 to vector<1x32xf32>
    %cst_38 = arith.constant 0.000000e+00 : f32
    %28 = vector.broadcast %cst_38 : f32 to vector<2x32xf32>
    %29 = vector.extract_strided_slice %25 {offsets = [0, 0, 0], sizes = [1, 1, 128], strides = [1, 1, 1]} : vector<1x4x128xf32> to vector<1x1x128xf32>
    %30 = vector.shape_cast %29 : vector<1x1x128xf32> to vector<1x128xf32>
    %cst_39 = arith.constant dense<0.000000e+00> : vector<1x128xf32>
    %31 = tpu.matmul %26, %3, %cst_39 {dimension_numbers = #tpu.dot_dimension_numbers<[1], [0], [0], [1], [0, 0, 1, 1], [], []>} : vector<1x32xf32>, vector<32x128xf32>, vector<1x128xf32> -> vector<1x128xf32>
    %32 = arith.addf %30, %31 : vector<1x128xf32>
    %33 = vector.extract_strided_slice %32 {offsets = [0, 0], sizes = [1, 32], strides = [1, 1]} : vector<1x128xf32> to vector<1x32xf32>
    %34 = arith.negf %33 : vector<1x32xf32>
    %35 = math.exp %34 : vector<1x32xf32>
    %cst_40 = arith.constant 1.000000e+00 : f32
    %36 = vector.broadcast %cst_40 : f32 to vector<1x32xf32>
    %37 = arith.addf %36, %35 : vector<1x32xf32>
    %38 = arith.divf %36, %37 : vector<1x32xf32>
    %39 = vector.extract_strided_slice %32 {offsets = [0, 32], sizes = [1, 32], strides = [1, 1]} : vector<1x128xf32> to vector<1x32xf32>
    %40 = arith.negf %39 : vector<1x32xf32>
    %41 = math.exp %40 : vector<1x32xf32>
    %cst_41 = arith.constant 1.000000e+00 : f32
    %42 = vector.broadcast %cst_41 : f32 to vector<1x32xf32>
    %43 = arith.addf %42, %41 : vector<1x32xf32>
    %44 = arith.divf %42, %43 : vector<1x32xf32>
    %45 = vector.extract_strided_slice %32 {offsets = [0, 64], sizes = [1, 32], strides = [1, 1]} : vector<1x128xf32> to vector<1x32xf32>
    %46 = math.tanh %45 : vector<1x32xf32>
    %47 = vector.extract_strided_slice %32 {offsets = [0, 96], sizes = [1, 32], strides = [1, 1]} : vector<1x128xf32> to vector<1x32xf32>
    %48 = arith.negf %47 : vector<1x32xf32>
    %49 = math.exp %48 : vector<1x32xf32>
    %cst_42 = arith.constant 1.000000e+00 : f32
    %50 = vector.broadcast %cst_42 : f32 to vector<1x32xf32>
    %51 = arith.addf %50, %49 : vector<1x32xf32>
    %52 = arith.divf %50, %51 : vector<1x32xf32>
    %53 = arith.mulf %44, %27 : vector<1x32xf32>
    %54 = arith.mulf %38, %46 : vector<1x32xf32>
    %55 = arith.addf %53, %54 : vector<1x32xf32>
    %56 = math.tanh %55 : vector<1x32xf32>
    %57 = arith.mulf %52, %56 : vector<1x32xf32>
    %58 = tpu.concatenate %57, %55 in 0 : vector<1x32xf32>, vector<1x32xf32> -> vector<2x32xf32>
    %59 = vector.extract_strided_slice %1 {offsets = [0, 0, 0], sizes = [1, 32, 32], strides = [1, 1, 1]} : vector<4x32x32xf32> to vector<1x32x32xf32>
    %60 = vector.shape_cast %59 : vector<1x32x32xf32> to vector<32x32xf32>
    %cst_43 = arith.constant dense<0.000000e+00> : vector<2x32xf32>
    %61 = tpu.matmul %58, %60, %cst_43 {dimension_numbers = #tpu.dot_dimension_numbers<[1], [0], [0], [1], [0, 0, 1, 1], [], []>} : vector<2x32xf32>, vector<32x32xf32>, vector<2x32xf32> -> vector<2x32xf32>
    %62 = arith.addf %28, %61 : vector<2x32xf32>
    %63 = vector.extract_strided_slice %25 {offsets = [0, 1, 0], sizes = [1, 1, 128], strides = [1, 1, 1]} : vector<1x4x128xf32> to vector<1x1x128xf32>
    %64 = vector.shape_cast %63 : vector<1x1x128xf32> to vector<1x128xf32>
    %cst_44 = arith.constant dense<0.000000e+00> : vector<1x128xf32>
    %65 = tpu.matmul %57, %3, %cst_44 {dimension_numbers = #tpu.dot_dimension_numbers<[1], [0], [0], [1], [0, 0, 1, 1], [], []>} : vector<1x32xf32>, vector<32x128xf32>, vector<1x128xf32> -> vector<1x128xf32>
    %66 = arith.addf %64, %65 : vector<1x128xf32>
    %67 = vector.extract_strided_slice %66 {offsets = [0, 0], sizes = [1, 32], strides = [1, 1]} : vector<1x128xf32> to vector<1x32xf32>
    %68 = arith.negf %67 : vector<1x32xf32>
    %69 = math.exp %68 : vector<1x32xf32>
    %cst_45 = arith.constant 1.000000e+00 : f32
    %70 = vector.broadcast %cst_45 : f32 to vector<1x32xf32>
    %71 = arith.addf %70, %69 : vector<1x32xf32>
    %72 = arith.divf %70, %71 : vector<1x32xf32>
    %73 = vector.extract_strided_slice %66 {offsets = [0, 32], sizes = [1, 32], strides = [1, 1]} : vector<1x128xf32> to vector<1x32xf32>
    %74 = arith.negf %73 : vector<1x32xf32>
    %75 = math.exp %74 : vector<1x32xf32>
    %cst_46 = arith.constant 1.000000e+00 : f32
    %76 = vector.broadcast %cst_46 : f32 to vector<1x32xf32>
    %77 = arith.addf %76, %75 : vector<1x32xf32>
    %78 = arith.divf %76, %77 : vector<1x32xf32>
    %79 = vector.extract_strided_slice %66 {offsets = [0, 64], sizes = [1, 32], strides = [1, 1]} : vector<1x128xf32> to vector<1x32xf32>
    %80 = math.tanh %79 : vector<1x32xf32>
    %81 = vector.extract_strided_slice %66 {offsets = [0, 96], sizes = [1, 32], strides = [1, 1]} : vector<1x128xf32> to vector<1x32xf32>
    %82 = arith.negf %81 : vector<1x32xf32>
    %83 = math.exp %82 : vector<1x32xf32>
    %cst_47 = arith.constant 1.000000e+00 : f32
    %84 = vector.broadcast %cst_47 : f32 to vector<1x32xf32>
    %85 = arith.addf %84, %83 : vector<1x32xf32>
    %86 = arith.divf %84, %85 : vector<1x32xf32>
    %87 = arith.mulf %78, %55 : vector<1x32xf32>
    %88 = arith.mulf %72, %80 : vector<1x32xf32>
    %89 = arith.addf %87, %88 : vector<1x32xf32>
    %90 = math.tanh %89 : vector<1x32xf32>
    %91 = arith.mulf %86, %90 : vector<1x32xf32>
    %92 = tpu.concatenate %91, %89 in 0 : vector<1x32xf32>, vector<1x32xf32> -> vector<2x32xf32>
    %93 = vector.extract_strided_slice %1 {offsets = [1, 0, 0], sizes = [1, 32, 32], strides = [1, 1, 1]} : vector<4x32x32xf32> to vector<1x32x32xf32>
    %94 = vector.shape_cast %93 : vector<1x32x32xf32> to vector<32x32xf32>
    %cst_48 = arith.constant dense<0.000000e+00> : vector<2x32xf32>
    %95 = tpu.matmul %92, %94, %cst_48 {dimension_numbers = #tpu.dot_dimension_numbers<[1], [0], [0], [1], [0, 0, 1, 1], [], []>} : vector<2x32xf32>, vector<32x32xf32>, vector<2x32xf32> -> vector<2x32xf32>
    %96 = arith.addf %62, %95 : vector<2x32xf32>
    %97 = vector.extract_strided_slice %25 {offsets = [0, 2, 0], sizes = [1, 1, 128], strides = [1, 1, 1]} : vector<1x4x128xf32> to vector<1x1x128xf32>
    %98 = vector.shape_cast %97 : vector<1x1x128xf32> to vector<1x128xf32>
    %cst_49 = arith.constant dense<0.000000e+00> : vector<1x128xf32>
    %99 = tpu.matmul %91, %3, %cst_49 {dimension_numbers = #tpu.dot_dimension_numbers<[1], [0], [0], [1], [0, 0, 1, 1], [], []>} : vector<1x32xf32>, vector<32x128xf32>, vector<1x128xf32> -> vector<1x128xf32>
    %100 = arith.addf %98, %99 : vector<1x128xf32>
    %101 = vector.extract_strided_slice %100 {offsets = [0, 0], sizes = [1, 32], strides = [1, 1]} : vector<1x128xf32> to vector<1x32xf32>
    %102 = arith.negf %101 : vector<1x32xf32>
    %103 = math.exp %102 : vector<1x32xf32>
    %cst_50 = arith.constant 1.000000e+00 : f32
    %104 = vector.broadcast %cst_50 : f32 to vector<1x32xf32>
    %105 = arith.addf %104, %103 : vector<1x32xf32>
    %106 = arith.divf %104, %105 : vector<1x32xf32>
    %107 = vector.extract_strided_slice %100 {offsets = [0, 32], sizes = [1, 32], strides = [1, 1]} : vector<1x128xf32> to vector<1x32xf32>
    %108 = arith.negf %107 : vector<1x32xf32>
    %109 = math.exp %108 : vector<1x32xf32>
    %cst_51 = arith.constant 1.000000e+00 : f32
    %110 = vector.broadcast %cst_51 : f32 to vector<1x32xf32>
    %111 = arith.addf %110, %109 : vector<1x32xf32>
    %112 = arith.divf %110, %111 : vector<1x32xf32>
    %113 = vector.extract_strided_slice %100 {offsets = [0, 64], sizes = [1, 32], strides = [1, 1]} : vector<1x128xf32> to vector<1x32xf32>
    %114 = math.tanh %113 : vector<1x32xf32>
    %115 = vector.extract_strided_slice %100 {offsets = [0, 96], sizes = [1, 32], strides = [1, 1]} : vector<1x128xf32> to vector<1x32xf32>
    %116 = arith.negf %115 : vector<1x32xf32>
    %117 = math.exp %116 : vector<1x32xf32>
    %cst_52 = arith.constant 1.000000e+00 : f32
    %118 = vector.broadcast %cst_52 : f32 to vector<1x32xf32>
    %119 = arith.addf %118, %117 : vector<1x32xf32>
    %120 = arith.divf %118, %119 : vector<1x32xf32>
    %121 = arith.mulf %112, %89 : vector<1x32xf32>
    %122 = arith.mulf %106, %114 : vector<1x32xf32>
    %123 = arith.addf %121, %122 : vector<1x32xf32>
    %124 = math.tanh %123 : vector<1x32xf32>
    %125 = arith.mulf %120, %124 : vector<1x32xf32>
    %126 = tpu.concatenate %125, %123 in 0 : vector<1x32xf32>, vector<1x32xf32> -> vector<2x32xf32>
    %127 = vector.extract_strided_slice %1 {offsets = [2, 0, 0], sizes = [1, 32, 32], strides = [1, 1, 1]} : vector<4x32x32xf32> to vector<1x32x32xf32>
    %128 = vector.shape_cast %127 : vector<1x32x32xf32> to vector<32x32xf32>
    %cst_53 = arith.constant dense<0.000000e+00> : vector<2x32xf32>
    %129 = tpu.matmul %126, %128, %cst_53 {dimension_numbers = #tpu.dot_dimension_numbers<[1], [0], [0], [1], [0, 0, 1, 1], [], []>} : vector<2x32xf32>, vector<32x32xf32>, vector<2x32xf32> -> vector<2x32xf32>
    %130 = arith.addf %96, %129 : vector<2x32xf32>
    %131 = vector.extract_strided_slice %25 {offsets = [0, 3, 0], sizes = [1, 1, 128], strides = [1, 1, 1]} : vector<1x4x128xf32> to vector<1x1x128xf32>
    %132 = vector.shape_cast %131 : vector<1x1x128xf32> to vector<1x128xf32>
    %cst_54 = arith.constant dense<0.000000e+00> : vector<1x128xf32>
    %133 = tpu.matmul %125, %3, %cst_54 {dimension_numbers = #tpu.dot_dimension_numbers<[1], [0], [0], [1], [0, 0, 1, 1], [], []>} : vector<1x32xf32>, vector<32x128xf32>, vector<1x128xf32> -> vector<1x128xf32>
    %134 = arith.addf %132, %133 : vector<1x128xf32>
    %135 = vector.extract_strided_slice %134 {offsets = [0, 0], sizes = [1, 32], strides = [1, 1]} : vector<1x128xf32> to vector<1x32xf32>
    %136 = arith.negf %135 : vector<1x32xf32>
    %137 = math.exp %136 : vector<1x32xf32>
    %cst_55 = arith.constant 1.000000e+00 : f32
    %138 = vector.broadcast %cst_55 : f32 to vector<1x32xf32>
    %139 = arith.addf %138, %137 : vector<1x32xf32>
    %140 = arith.divf %138, %139 : vector<1x32xf32>
    %141 = vector.extract_strided_slice %134 {offsets = [0, 32], sizes = [1, 32], strides = [1, 1]} : vector<1x128xf32> to vector<1x32xf32>
    %142 = arith.negf %141 : vector<1x32xf32>
    %143 = math.exp %142 : vector<1x32xf32>
    %cst_56 = arith.constant 1.000000e+00 : f32
    %144 = vector.broadcast %cst_56 : f32 to vector<1x32xf32>
    %145 = arith.addf %144, %143 : vector<1x32xf32>
    %146 = arith.divf %144, %145 : vector<1x32xf32>
    %147 = vector.extract_strided_slice %134 {offsets = [0, 64], sizes = [1, 32], strides = [1, 1]} : vector<1x128xf32> to vector<1x32xf32>
    %148 = math.tanh %147 : vector<1x32xf32>
    %149 = vector.extract_strided_slice %134 {offsets = [0, 96], sizes = [1, 32], strides = [1, 1]} : vector<1x128xf32> to vector<1x32xf32>
    %150 = arith.negf %149 : vector<1x32xf32>
    %151 = math.exp %150 : vector<1x32xf32>
    %cst_57 = arith.constant 1.000000e+00 : f32
    %152 = vector.broadcast %cst_57 : f32 to vector<1x32xf32>
    %153 = arith.addf %152, %151 : vector<1x32xf32>
    %154 = arith.divf %152, %153 : vector<1x32xf32>
    %155 = arith.mulf %146, %123 : vector<1x32xf32>
    %156 = arith.mulf %140, %148 : vector<1x32xf32>
    %157 = arith.addf %155, %156 : vector<1x32xf32>
    %158 = math.tanh %157 : vector<1x32xf32>
    %159 = arith.mulf %154, %158 : vector<1x32xf32>
    %160 = tpu.concatenate %159, %157 in 0 : vector<1x32xf32>, vector<1x32xf32> -> vector<2x32xf32>
    %161 = vector.extract_strided_slice %1 {offsets = [3, 0, 0], sizes = [1, 32, 32], strides = [1, 1, 1]} : vector<4x32x32xf32> to vector<1x32x32xf32>
    %162 = vector.shape_cast %161 : vector<1x32x32xf32> to vector<32x32xf32>
    %cst_58 = arith.constant dense<0.000000e+00> : vector<2x32xf32>
    %163 = tpu.matmul %160, %162, %cst_58 {dimension_numbers = #tpu.dot_dimension_numbers<[1], [0], [0], [1], [0, 0, 1, 1], [], []>} : vector<2x32xf32>, vector<32x32xf32>, vector<2x32xf32> -> vector<2x32xf32>
    %164 = arith.addf %130, %163 : vector<2x32xf32>
    %165 = vector.extract_strided_slice %164 {offsets = [0, 0], sizes = [1, 32], strides = [1, 1]} : vector<2x32xf32> to vector<1x32xf32>
    %166 = arith.addf %165, %11 : vector<1x32xf32>
    %167 = vector.extract_strided_slice %164 {offsets = [1, 0], sizes = [1, 32], strides = [1, 1]} : vector<2x32xf32> to vector<1x32xf32>
    %168 = arith.addf %167, %11 : vector<1x32xf32>
    %c0_59 = arith.constant 0 : index
    %c0_60 = arith.constant 0 : index
    %c0_61 = arith.constant 0 : index
    %169 = vector.load %arg2[%c0_59, %c0_60, %c0_61] : memref<1x6x16xf32, #tpu.memory_space<vmem>>, vector<1x6x16xf32>
    %170 = vector.shape_cast %169 : vector<1x6x16xf32> to vector<6x16xf32>
    %cst_62 = arith.constant dense<0.000000e+00> : vector<6x128xf32>
    %171 = tpu.matmul %170, %4, %cst_62 {dimension_numbers = #tpu.dot_dimension_numbers<[1], [0], [0], [1], [0, 0, 1, 1], [], []>} : vector<6x16xf32>, vector<16x128xf32>, vector<6x128xf32> -> vector<6x128xf32>
    %172 = vector.broadcast %13 : vector<1x128xf32> to vector<6x128xf32>
    %173 = arith.addf %171, %172 : vector<6x128xf32>
    %174 = vector.shape_cast %173 : vector<6x128xf32> to vector<1x6x128xf32>
    %cst_63 = arith.constant dense<0.000000e+00> : vector<6x32xf32>
    %175 = tpu.matmul %170, %8, %cst_63 {dimension_numbers = #tpu.dot_dimension_numbers<[1], [0], [0], [1], [0, 0, 1, 1], [], []>} : vector<6x16xf32>, vector<16x32xf32>, vector<6x32xf32> -> vector<6x32xf32>
    %176 = vector.shape_cast %175 : vector<6x32xf32> to vector<1x6x32xf32>
    %cst_64 = arith.constant dense<0.000000e+00> : vector<1x32xf32>
    %177 = tpu.matmul %166, %7, %cst_64 {dimension_numbers = #tpu.dot_dimension_numbers<[1], [0], [0], [1], [0, 0, 1, 1], [], []>} : vector<1x32xf32>, vector<32x32xf32>, vector<1x32xf32> -> vector<1x32xf32>
    %178 = arith.addf %177, %14 : vector<1x32xf32>
    %179 = vector.extract_strided_slice %174 {offsets = [0, 0, 0], sizes = [1, 1, 128], strides = [1, 1, 1]} : vector<1x6x128xf32> to vector<1x1x128xf32>
    %180 = vector.shape_cast %179 : vector<1x1x128xf32> to vector<1x128xf32>
    %cst_65 = arith.constant dense<0.000000e+00> : vector<1x128xf32>
    %181 = tpu.matmul %166, %5, %cst_65 {dimension_numbers = #tpu.dot_dimension_numbers<[1], [0], [0], [1], [0, 0, 1, 1], [], []>} : vector<1x32xf32>, vector<32x128xf32>, vector<1x128xf32> -> vector<1x128xf32>
    %182 = arith.addf %180, %181 : vector<1x128xf32>
    %183 = vector.extract_strided_slice %182 {offsets = [0, 0], sizes = [1, 32], strides = [1, 1]} : vector<1x128xf32> to vector<1x32xf32>
    %184 = arith.negf %183 : vector<1x32xf32>
    %185 = math.exp %184 : vector<1x32xf32>
    %cst_66 = arith.constant 1.000000e+00 : f32
    %186 = vector.broadcast %cst_66 : f32 to vector<1x32xf32>
    %187 = arith.addf %186, %185 : vector<1x32xf32>
    %188 = arith.divf %186, %187 : vector<1x32xf32>
    %189 = vector.extract_strided_slice %182 {offsets = [0, 32], sizes = [1, 32], strides = [1, 1]} : vector<1x128xf32> to vector<1x32xf32>
    %190 = arith.negf %189 : vector<1x32xf32>
    %191 = math.exp %190 : vector<1x32xf32>
    %cst_67 = arith.constant 1.000000e+00 : f32
    %192 = vector.broadcast %cst_67 : f32 to vector<1x32xf32>
    %193 = arith.addf %192, %191 : vector<1x32xf32>
    %194 = arith.divf %192, %193 : vector<1x32xf32>
    %195 = vector.extract_strided_slice %182 {offsets = [0, 64], sizes = [1, 32], strides = [1, 1]} : vector<1x128xf32> to vector<1x32xf32>
    %196 = math.tanh %195 : vector<1x32xf32>
    %197 = vector.extract_strided_slice %182 {offsets = [0, 96], sizes = [1, 32], strides = [1, 1]} : vector<1x128xf32> to vector<1x32xf32>
    %198 = arith.negf %197 : vector<1x32xf32>
    %199 = math.exp %198 : vector<1x32xf32>
    %cst_68 = arith.constant 1.000000e+00 : f32
    %200 = vector.broadcast %cst_68 : f32 to vector<1x32xf32>
    %201 = arith.addf %200, %199 : vector<1x32xf32>
    %202 = arith.divf %200, %201 : vector<1x32xf32>
    %203 = arith.mulf %194, %168 : vector<1x32xf32>
    %204 = arith.mulf %188, %196 : vector<1x32xf32>
    %205 = arith.addf %203, %204 : vector<1x32xf32>
    %206 = math.tanh %205 : vector<1x32xf32>
    %207 = arith.mulf %202, %206 : vector<1x32xf32>
    %cst_69 = arith.constant dense<0.000000e+00> : vector<1x32xf32>
    %208 = tpu.matmul %207, %6, %cst_69 {dimension_numbers = #tpu.dot_dimension_numbers<[1], [0], [0], [1], [0, 0, 1, 1], [], []>} : vector<1x32xf32>, vector<32x32xf32>, vector<1x32xf32> -> vector<1x32xf32>
    %209 = arith.addf %208, %178 : vector<1x32xf32>
    %210 = vector.extract_strided_slice %176 {offsets = [0, 0, 0], sizes = [1, 1, 32], strides = [1, 1, 1]} : vector<1x6x32xf32> to vector<1x1x32xf32>
    %211 = vector.shape_cast %210 : vector<1x1x32xf32> to vector<1x32xf32>
    %212 = arith.addf %209, %211 : vector<1x32xf32>
    %213 = math.tanh %212 : vector<1x32xf32>
    %214 = vector.shape_cast %213 : vector<1x32xf32> to vector<1x1x32xf32>
    %215 = vector.extract_strided_slice %174 {offsets = [0, 1, 0], sizes = [1, 1, 128], strides = [1, 1, 1]} : vector<1x6x128xf32> to vector<1x1x128xf32>
    %216 = vector.shape_cast %215 : vector<1x1x128xf32> to vector<1x128xf32>
    %cst_70 = arith.constant dense<0.000000e+00> : vector<1x128xf32>
    %217 = tpu.matmul %213, %5, %cst_70 {dimension_numbers = #tpu.dot_dimension_numbers<[1], [0], [0], [1], [0, 0, 1, 1], [], []>} : vector<1x32xf32>, vector<32x128xf32>, vector<1x128xf32> -> vector<1x128xf32>
    %218 = arith.addf %216, %217 : vector<1x128xf32>
    %219 = vector.extract_strided_slice %218 {offsets = [0, 0], sizes = [1, 32], strides = [1, 1]} : vector<1x128xf32> to vector<1x32xf32>
    %220 = arith.negf %219 : vector<1x32xf32>
    %221 = math.exp %220 : vector<1x32xf32>
    %cst_71 = arith.constant 1.000000e+00 : f32
    %222 = vector.broadcast %cst_71 : f32 to vector<1x32xf32>
    %223 = arith.addf %222, %221 : vector<1x32xf32>
    %224 = arith.divf %222, %223 : vector<1x32xf32>
    %225 = vector.extract_strided_slice %218 {offsets = [0, 32], sizes = [1, 32], strides = [1, 1]} : vector<1x128xf32> to vector<1x32xf32>
    %226 = arith.negf %225 : vector<1x32xf32>
    %227 = math.exp %226 : vector<1x32xf32>
    %cst_72 = arith.constant 1.000000e+00 : f32
    %228 = vector.broadcast %cst_72 : f32 to vector<1x32xf32>
    %229 = arith.addf %228, %227 : vector<1x32xf32>
    %230 = arith.divf %228, %229 : vector<1x32xf32>
    %231 = vector.extract_strided_slice %218 {offsets = [0, 64], sizes = [1, 32], strides = [1, 1]} : vector<1x128xf32> to vector<1x32xf32>
    %232 = math.tanh %231 : vector<1x32xf32>
    %233 = vector.extract_strided_slice %218 {offsets = [0, 96], sizes = [1, 32], strides = [1, 1]} : vector<1x128xf32> to vector<1x32xf32>
    %234 = arith.negf %233 : vector<1x32xf32>
    %235 = math.exp %234 : vector<1x32xf32>
    %cst_73 = arith.constant 1.000000e+00 : f32
    %236 = vector.broadcast %cst_73 : f32 to vector<1x32xf32>
    %237 = arith.addf %236, %235 : vector<1x32xf32>
    %238 = arith.divf %236, %237 : vector<1x32xf32>
    %239 = arith.mulf %230, %205 : vector<1x32xf32>
    %240 = arith.mulf %224, %232 : vector<1x32xf32>
    %241 = arith.addf %239, %240 : vector<1x32xf32>
    %242 = math.tanh %241 : vector<1x32xf32>
    %243 = arith.mulf %238, %242 : vector<1x32xf32>
    %cst_74 = arith.constant dense<0.000000e+00> : vector<1x32xf32>
    %244 = tpu.matmul %243, %6, %cst_74 {dimension_numbers = #tpu.dot_dimension_numbers<[1], [0], [0], [1], [0, 0, 1, 1], [], []>} : vector<1x32xf32>, vector<32x32xf32>, vector<1x32xf32> -> vector<1x32xf32>
    %245 = arith.addf %244, %178 : vector<1x32xf32>
    %246 = vector.extract_strided_slice %176 {offsets = [0, 1, 0], sizes = [1, 1, 32], strides = [1, 1, 1]} : vector<1x6x32xf32> to vector<1x1x32xf32>
    %247 = vector.shape_cast %246 : vector<1x1x32xf32> to vector<1x32xf32>
    %248 = arith.addf %245, %247 : vector<1x32xf32>
    %249 = math.tanh %248 : vector<1x32xf32>
    %250 = vector.shape_cast %249 : vector<1x32xf32> to vector<1x1x32xf32>
    %251 = vector.extract_strided_slice %174 {offsets = [0, 2, 0], sizes = [1, 1, 128], strides = [1, 1, 1]} : vector<1x6x128xf32> to vector<1x1x128xf32>
    %252 = vector.shape_cast %251 : vector<1x1x128xf32> to vector<1x128xf32>
    %cst_75 = arith.constant dense<0.000000e+00> : vector<1x128xf32>
    %253 = tpu.matmul %249, %5, %cst_75 {dimension_numbers = #tpu.dot_dimension_numbers<[1], [0], [0], [1], [0, 0, 1, 1], [], []>} : vector<1x32xf32>, vector<32x128xf32>, vector<1x128xf32> -> vector<1x128xf32>
    %254 = arith.addf %252, %253 : vector<1x128xf32>
    %255 = vector.extract_strided_slice %254 {offsets = [0, 0], sizes = [1, 32], strides = [1, 1]} : vector<1x128xf32> to vector<1x32xf32>
    %256 = arith.negf %255 : vector<1x32xf32>
    %257 = math.exp %256 : vector<1x32xf32>
    %cst_76 = arith.constant 1.000000e+00 : f32
    %258 = vector.broadcast %cst_76 : f32 to vector<1x32xf32>
    %259 = arith.addf %258, %257 : vector<1x32xf32>
    %260 = arith.divf %258, %259 : vector<1x32xf32>
    %261 = vector.extract_strided_slice %254 {offsets = [0, 32], sizes = [1, 32], strides = [1, 1]} : vector<1x128xf32> to vector<1x32xf32>
    %262 = arith.negf %261 : vector<1x32xf32>
    %263 = math.exp %262 : vector<1x32xf32>
    %cst_77 = arith.constant 1.000000e+00 : f32
    %264 = vector.broadcast %cst_77 : f32 to vector<1x32xf32>
    %265 = arith.addf %264, %263 : vector<1x32xf32>
    %266 = arith.divf %264, %265 : vector<1x32xf32>
    %267 = vector.extract_strided_slice %254 {offsets = [0, 64], sizes = [1, 32], strides = [1, 1]} : vector<1x128xf32> to vector<1x32xf32>
    %268 = math.tanh %267 : vector<1x32xf32>
    %269 = vector.extract_strided_slice %254 {offsets = [0, 96], sizes = [1, 32], strides = [1, 1]} : vector<1x128xf32> to vector<1x32xf32>
    %270 = arith.negf %269 : vector<1x32xf32>
    %271 = math.exp %270 : vector<1x32xf32>
    %cst_78 = arith.constant 1.000000e+00 : f32
    %272 = vector.broadcast %cst_78 : f32 to vector<1x32xf32>
    %273 = arith.addf %272, %271 : vector<1x32xf32>
    %274 = arith.divf %272, %273 : vector<1x32xf32>
    %275 = arith.mulf %266, %241 : vector<1x32xf32>
    %276 = arith.mulf %260, %268 : vector<1x32xf32>
    %277 = arith.addf %275, %276 : vector<1x32xf32>
    %278 = math.tanh %277 : vector<1x32xf32>
    %279 = arith.mulf %274, %278 : vector<1x32xf32>
    %cst_79 = arith.constant dense<0.000000e+00> : vector<1x32xf32>
    %280 = tpu.matmul %279, %6, %cst_79 {dimension_numbers = #tpu.dot_dimension_numbers<[1], [0], [0], [1], [0, 0, 1, 1], [], []>} : vector<1x32xf32>, vector<32x32xf32>, vector<1x32xf32> -> vector<1x32xf32>
    %281 = arith.addf %280, %178 : vector<1x32xf32>
    %282 = vector.extract_strided_slice %176 {offsets = [0, 2, 0], sizes = [1, 1, 32], strides = [1, 1, 1]} : vector<1x6x32xf32> to vector<1x1x32xf32>
    %283 = vector.shape_cast %282 : vector<1x1x32xf32> to vector<1x32xf32>
    %284 = arith.addf %281, %283 : vector<1x32xf32>
    %285 = math.tanh %284 : vector<1x32xf32>
    %286 = vector.shape_cast %285 : vector<1x32xf32> to vector<1x1x32xf32>
    %287 = vector.extract_strided_slice %174 {offsets = [0, 3, 0], sizes = [1, 1, 128], strides = [1, 1, 1]} : vector<1x6x128xf32> to vector<1x1x128xf32>
    %288 = vector.shape_cast %287 : vector<1x1x128xf32> to vector<1x128xf32>
    %cst_80 = arith.constant dense<0.000000e+00> : vector<1x128xf32>
    %289 = tpu.matmul %285, %5, %cst_80 {dimension_numbers = #tpu.dot_dimension_numbers<[1], [0], [0], [1], [0, 0, 1, 1], [], []>} : vector<1x32xf32>, vector<32x128xf32>, vector<1x128xf32> -> vector<1x128xf32>
    %290 = arith.addf %288, %289 : vector<1x128xf32>
    %291 = vector.extract_strided_slice %290 {offsets = [0, 0], sizes = [1, 32], strides = [1, 1]} : vector<1x128xf32> to vector<1x32xf32>
    %292 = arith.negf %291 : vector<1x32xf32>
    %293 = math.exp %292 : vector<1x32xf32>
    %cst_81 = arith.constant 1.000000e+00 : f32
    %294 = vector.broadcast %cst_81 : f32 to vector<1x32xf32>
    %295 = arith.addf %294, %293 : vector<1x32xf32>
    %296 = arith.divf %294, %295 : vector<1x32xf32>
    %297 = vector.extract_strided_slice %290 {offsets = [0, 32], sizes = [1, 32], strides = [1, 1]} : vector<1x128xf32> to vector<1x32xf32>
    %298 = arith.negf %297 : vector<1x32xf32>
    %299 = math.exp %298 : vector<1x32xf32>
    %cst_82 = arith.constant 1.000000e+00 : f32
    %300 = vector.broadcast %cst_82 : f32 to vector<1x32xf32>
    %301 = arith.addf %300, %299 : vector<1x32xf32>
    %302 = arith.divf %300, %301 : vector<1x32xf32>
    %303 = vector.extract_strided_slice %290 {offsets = [0, 64], sizes = [1, 32], strides = [1, 1]} : vector<1x128xf32> to vector<1x32xf32>
    %304 = math.tanh %303 : vector<1x32xf32>
    %305 = vector.extract_strided_slice %290 {offsets = [0, 96], sizes = [1, 32], strides = [1, 1]} : vector<1x128xf32> to vector<1x32xf32>
    %306 = arith.negf %305 : vector<1x32xf32>
    %307 = math.exp %306 : vector<1x32xf32>
    %cst_83 = arith.constant 1.000000e+00 : f32
    %308 = vector.broadcast %cst_83 : f32 to vector<1x32xf32>
    %309 = arith.addf %308, %307 : vector<1x32xf32>
    %310 = arith.divf %308, %309 : vector<1x32xf32>
    %311 = arith.mulf %302, %277 : vector<1x32xf32>
    %312 = arith.mulf %296, %304 : vector<1x32xf32>
    %313 = arith.addf %311, %312 : vector<1x32xf32>
    %314 = math.tanh %313 : vector<1x32xf32>
    %315 = arith.mulf %310, %314 : vector<1x32xf32>
    %cst_84 = arith.constant dense<0.000000e+00> : vector<1x32xf32>
    %316 = tpu.matmul %315, %6, %cst_84 {dimension_numbers = #tpu.dot_dimension_numbers<[1], [0], [0], [1], [0, 0, 1, 1], [], []>} : vector<1x32xf32>, vector<32x32xf32>, vector<1x32xf32> -> vector<1x32xf32>
    %317 = arith.addf %316, %178 : vector<1x32xf32>
    %318 = vector.extract_strided_slice %176 {offsets = [0, 3, 0], sizes = [1, 1, 32], strides = [1, 1, 1]} : vector<1x6x32xf32> to vector<1x1x32xf32>
    %319 = vector.shape_cast %318 : vector<1x1x32xf32> to vector<1x32xf32>
    %320 = arith.addf %317, %319 : vector<1x32xf32>
    %321 = math.tanh %320 : vector<1x32xf32>
    %322 = vector.shape_cast %321 : vector<1x32xf32> to vector<1x1x32xf32>
    %323 = vector.extract_strided_slice %174 {offsets = [0, 4, 0], sizes = [1, 1, 128], strides = [1, 1, 1]} : vector<1x6x128xf32> to vector<1x1x128xf32>
    %324 = vector.shape_cast %323 : vector<1x1x128xf32> to vector<1x128xf32>
    %cst_85 = arith.constant dense<0.000000e+00> : vector<1x128xf32>
    %325 = tpu.matmul %321, %5, %cst_85 {dimension_numbers = #tpu.dot_dimension_numbers<[1], [0], [0], [1], [0, 0, 1, 1], [], []>} : vector<1x32xf32>, vector<32x128xf32>, vector<1x128xf32> -> vector<1x128xf32>
    %326 = arith.addf %324, %325 : vector<1x128xf32>
    %327 = vector.extract_strided_slice %326 {offsets = [0, 0], sizes = [1, 32], strides = [1, 1]} : vector<1x128xf32> to vector<1x32xf32>
    %328 = arith.negf %327 : vector<1x32xf32>
    %329 = math.exp %328 : vector<1x32xf32>
    %cst_86 = arith.constant 1.000000e+00 : f32
    %330 = vector.broadcast %cst_86 : f32 to vector<1x32xf32>
    %331 = arith.addf %330, %329 : vector<1x32xf32>
    %332 = arith.divf %330, %331 : vector<1x32xf32>
    %333 = vector.extract_strided_slice %326 {offsets = [0, 32], sizes = [1, 32], strides = [1, 1]} : vector<1x128xf32> to vector<1x32xf32>
    %334 = arith.negf %333 : vector<1x32xf32>
    %335 = math.exp %334 : vector<1x32xf32>
    %cst_87 = arith.constant 1.000000e+00 : f32
    %336 = vector.broadcast %cst_87 : f32 to vector<1x32xf32>
    %337 = arith.addf %336, %335 : vector<1x32xf32>
    %338 = arith.divf %336, %337 : vector<1x32xf32>
    %339 = vector.extract_strided_slice %326 {offsets = [0, 64], sizes = [1, 32], strides = [1, 1]} : vector<1x128xf32> to vector<1x32xf32>
    %340 = math.tanh %339 : vector<1x32xf32>
    %341 = vector.extract_strided_slice %326 {offsets = [0, 96], sizes = [1, 32], strides = [1, 1]} : vector<1x128xf32> to vector<1x32xf32>
    %342 = arith.negf %341 : vector<1x32xf32>
    %343 = math.exp %342 : vector<1x32xf32>
    %cst_88 = arith.constant 1.000000e+00 : f32
    %344 = vector.broadcast %cst_88 : f32 to vector<1x32xf32>
    %345 = arith.addf %344, %343 : vector<1x32xf32>
    %346 = arith.divf %344, %345 : vector<1x32xf32>
    %347 = arith.mulf %338, %313 : vector<1x32xf32>
    %348 = arith.mulf %332, %340 : vector<1x32xf32>
    %349 = arith.addf %347, %348 : vector<1x32xf32>
    %350 = math.tanh %349 : vector<1x32xf32>
    %351 = arith.mulf %346, %350 : vector<1x32xf32>
    %cst_89 = arith.constant dense<0.000000e+00> : vector<1x32xf32>
    %352 = tpu.matmul %351, %6, %cst_89 {dimension_numbers = #tpu.dot_dimension_numbers<[1], [0], [0], [1], [0, 0, 1, 1], [], []>} : vector<1x32xf32>, vector<32x32xf32>, vector<1x32xf32> -> vector<1x32xf32>
    %353 = arith.addf %352, %178 : vector<1x32xf32>
    %354 = vector.extract_strided_slice %176 {offsets = [0, 4, 0], sizes = [1, 1, 32], strides = [1, 1, 1]} : vector<1x6x32xf32> to vector<1x1x32xf32>
    %355 = vector.shape_cast %354 : vector<1x1x32xf32> to vector<1x32xf32>
    %356 = arith.addf %353, %355 : vector<1x32xf32>
    %357 = math.tanh %356 : vector<1x32xf32>
    %358 = vector.shape_cast %357 : vector<1x32xf32> to vector<1x1x32xf32>
    %359 = vector.extract_strided_slice %174 {offsets = [0, 5, 0], sizes = [1, 1, 128], strides = [1, 1, 1]} : vector<1x6x128xf32> to vector<1x1x128xf32>
    %360 = vector.shape_cast %359 : vector<1x1x128xf32> to vector<1x128xf32>
    %cst_90 = arith.constant dense<0.000000e+00> : vector<1x128xf32>
    %361 = tpu.matmul %357, %5, %cst_90 {dimension_numbers = #tpu.dot_dimension_numbers<[1], [0], [0], [1], [0, 0, 1, 1], [], []>} : vector<1x32xf32>, vector<32x128xf32>, vector<1x128xf32> -> vector<1x128xf32>
    %362 = arith.addf %360, %361 : vector<1x128xf32>
    %363 = vector.extract_strided_slice %362 {offsets = [0, 0], sizes = [1, 32], strides = [1, 1]} : vector<1x128xf32> to vector<1x32xf32>
    %364 = arith.negf %363 : vector<1x32xf32>
    %365 = math.exp %364 : vector<1x32xf32>
    %cst_91 = arith.constant 1.000000e+00 : f32
    %366 = vector.broadcast %cst_91 : f32 to vector<1x32xf32>
    %367 = arith.addf %366, %365 : vector<1x32xf32>
    %368 = arith.divf %366, %367 : vector<1x32xf32>
    %369 = vector.extract_strided_slice %362 {offsets = [0, 32], sizes = [1, 32], strides = [1, 1]} : vector<1x128xf32> to vector<1x32xf32>
    %370 = arith.negf %369 : vector<1x32xf32>
    %371 = math.exp %370 : vector<1x32xf32>
    %cst_92 = arith.constant 1.000000e+00 : f32
    %372 = vector.broadcast %cst_92 : f32 to vector<1x32xf32>
    %373 = arith.addf %372, %371 : vector<1x32xf32>
    %374 = arith.divf %372, %373 : vector<1x32xf32>
    %375 = vector.extract_strided_slice %362 {offsets = [0, 64], sizes = [1, 32], strides = [1, 1]} : vector<1x128xf32> to vector<1x32xf32>
    %376 = math.tanh %375 : vector<1x32xf32>
    %377 = vector.extract_strided_slice %362 {offsets = [0, 96], sizes = [1, 32], strides = [1, 1]} : vector<1x128xf32> to vector<1x32xf32>
    %378 = arith.negf %377 : vector<1x32xf32>
    %379 = math.exp %378 : vector<1x32xf32>
    %cst_93 = arith.constant 1.000000e+00 : f32
    %380 = vector.broadcast %cst_93 : f32 to vector<1x32xf32>
    %381 = arith.addf %380, %379 : vector<1x32xf32>
    %382 = arith.divf %380, %381 : vector<1x32xf32>
    %383 = arith.mulf %374, %349 : vector<1x32xf32>
    %384 = arith.mulf %368, %376 : vector<1x32xf32>
    %385 = arith.addf %383, %384 : vector<1x32xf32>
    %386 = math.tanh %385 : vector<1x32xf32>
    %387 = arith.mulf %382, %386 : vector<1x32xf32>
    %cst_94 = arith.constant dense<0.000000e+00> : vector<1x32xf32>
    %388 = tpu.matmul %387, %6, %cst_94 {dimension_numbers = #tpu.dot_dimension_numbers<[1], [0], [0], [1], [0, 0, 1, 1], [], []>} : vector<1x32xf32>, vector<32x32xf32>, vector<1x32xf32> -> vector<1x32xf32>
    %389 = arith.addf %388, %178 : vector<1x32xf32>
    %390 = vector.extract_strided_slice %176 {offsets = [0, 5, 0], sizes = [1, 1, 32], strides = [1, 1, 1]} : vector<1x6x32xf32> to vector<1x1x32xf32>
    %391 = vector.shape_cast %390 : vector<1x1x32xf32> to vector<1x32xf32>
    %392 = arith.addf %389, %391 : vector<1x32xf32>
    %393 = math.tanh %392 : vector<1x32xf32>
    %394 = vector.shape_cast %393 : vector<1x32xf32> to vector<1x1x32xf32>
    %395 = tpu.concatenate %214, %250, %286, %322, %358, %394 in 1 : vector<1x1x32xf32>, vector<1x1x32xf32>, vector<1x1x32xf32>, vector<1x1x32xf32>, vector<1x1x32xf32>, vector<1x1x32xf32> -> vector<1x6x32xf32>
    %396 = vector.shape_cast %395 : vector<1x6x32xf32> to vector<6x32xf32>
    %cst_95 = arith.constant dense<0.000000e+00> : vector<6x40xf32>
    %397 = tpu.matmul %396, %9, %cst_95 {dimension_numbers = #tpu.dot_dimension_numbers<[1], [0], [0], [1], [0, 0, 1, 1], [], []>} : vector<6x32xf32>, vector<32x40xf32>, vector<6x40xf32> -> vector<6x40xf32>
    %398 = vector.broadcast %15 : vector<1x40xf32> to vector<6x40xf32>
    %399 = arith.addf %397, %398 : vector<6x40xf32>
    %400 = vector.shape_cast %399 : vector<6x40xf32> to vector<1x6x40xf32>
    %c0_96 = arith.constant 0 : index
    %c0_97 = arith.constant 0 : index
    %c0_98 = arith.constant 0 : index
    %401 = vector.load %arg19[%c0_96, %c0_97, %c0_98] : memref<1x6x40xf32, #tpu.memory_space<vmem>>, vector<1x6x40xf32>
    tpu.vector_store %arg19[%c0_96, %c0_97, %c0_98], %400 {strides = array<i32>} : memref<1x6x40xf32, #tpu.memory_space<vmem>>, vector<1x6x40xf32>,
    return
  }
  func.func @transform_0(%arg0: i32) -> (i32, i32, i32) {
    %c0_i32 = arith.constant 0 : i32
    %c0_i32_0 = arith.constant 0 : i32
    %c0_i32_1 = arith.constant 0 : i32
    return %arg0, %c0_i32, %c0_i32_0 : i32, i32, i32
  }
  func.func @transform_1(%arg0: i32) -> (i32, i32, i32) {
    %c0_i32 = arith.constant 0 : i32
    %c0_i32_0 = arith.constant 0 : i32
    %c0_i32_1 = arith.constant 0 : i32
    return %arg0, %c0_i32, %c0_i32_0 : i32, i32, i32
  }
  func.func @transform_2(%arg0: i32) -> (i32, i32) {
    %c0_i32 = arith.constant 0 : i32
    %c0_i32_0 = arith.constant 0 : i32
    %c0_i32_1 = arith.constant 0 : i32
    return %c0_i32, %c0_i32_0 : i32, i32
  }
  func.func @transform_3(%arg0: i32) -> (i32, i32) {
    %c0_i32 = arith.constant 0 : i32
    %c0_i32_0 = arith.constant 0 : i32
    %c0_i32_1 = arith.constant 0 : i32
    return %c0_i32, %c0_i32_0 : i32, i32
  }
  func.func @transform_4(%arg0: i32) -> (i32, i32, i32) {
    %c0_i32 = arith.constant 0 : i32
    %c0_i32_0 = arith.constant 0 : i32
    %c0_i32_1 = arith.constant 0 : i32
    %c0_i32_2 = arith.constant 0 : i32
    return %c0_i32, %c0_i32_0, %c0_i32_1 : i32, i32, i32
  }
  func.func @transform_5(%arg0: i32) -> (i32, i32) {
    %c0_i32 = arith.constant 0 : i32
    %c0_i32_0 = arith.constant 0 : i32
    %c0_i32_1 = arith.constant 0 : i32
    return %c0_i32, %c0_i32_0 : i32, i32
  }
  func.func @transform_6(%arg0: i32) -> (i32, i32) {
    %c0_i32 = arith.constant 0 : i32
    %c0_i32_0 = arith.constant 0 : i32
    %c0_i32_1 = arith.constant 0 : i32
    return %c0_i32, %c0_i32_0 : i32, i32
  }
  func.func @transform_7(%arg0: i32) -> (i32, i32) {
    %c0_i32 = arith.constant 0 : i32
    %c0_i32_0 = arith.constant 0 : i32
    %c0_i32_1 = arith.constant 0 : i32
    return %c0_i32, %c0_i32_0 : i32, i32
  }
  func.func @transform_8(%arg0: i32) -> (i32, i32) {
    %c0_i32 = arith.constant 0 : i32
    %c0_i32_0 = arith.constant 0 : i32
    %c0_i32_1 = arith.constant 0 : i32
    return %c0_i32, %c0_i32_0 : i32, i32
  }
  func.func @transform_9(%arg0: i32) -> (i32, i32) {
    %c0_i32 = arith.constant 0 : i32
    %c0_i32_0 = arith.constant 0 : i32
    %c0_i32_1 = arith.constant 0 : i32
    return %c0_i32, %c0_i32_0 : i32, i32
  }
  func.func @transform_10(%arg0: i32) -> (i32, i32) {
    %c0_i32 = arith.constant 0 : i32
    %c0_i32_0 = arith.constant 0 : i32
    %c0_i32_1 = arith.constant 0 : i32
    return %c0_i32, %c0_i32_0 : i32, i32
  }
  func.func @transform_11(%arg0: i32) -> (i32, i32) {
    %c0_i32 = arith.constant 0 : i32
    %c0_i32_0 = arith.constant 0 : i32
    %c0_i32_1 = arith.constant 0 : i32
    return %c0_i32, %c0_i32_0 : i32, i32
  }
  func.func @transform_12(%arg0: i32) -> (i32, i32) {
    %c0_i32 = arith.constant 0 : i32
    %c0_i32_0 = arith.constant 0 : i32
    %c0_i32_1 = arith.constant 0 : i32
    return %c0_i32, %c0_i32_0 : i32, i32
  }
  func.func @transform_13(%arg0: i32) -> (i32, i32) {
    %c0_i32 = arith.constant 0 : i32
    %c0_i32_0 = arith.constant 0 : i32
    %c0_i32_1 = arith.constant 0 : i32
    return %c0_i32, %c0_i32_0 : i32, i32
  }
  func.func @transform_14(%arg0: i32) -> (i32, i32) {
    %c0_i32 = arith.constant 0 : i32
    %c0_i32_0 = arith.constant 0 : i32
    %c0_i32_1 = arith.constant 0 : i32
    return %c0_i32, %c0_i32_0 : i32, i32
  }
  func.func @transform_15(%arg0: i32) -> (i32, i32) {
    %c0_i32 = arith.constant 0 : i32
    %c0_i32_0 = arith.constant 0 : i32
    %c0_i32_1 = arith.constant 0 : i32
    return %c0_i32, %c0_i32_0 : i32, i32
  }
  func.func @transform_16(%arg0: i32) -> (i32, i32) {
    %c0_i32 = arith.constant 0 : i32
    %c0_i32_0 = arith.constant 0 : i32
    %c0_i32_1 = arith.constant 0 : i32
    return %c0_i32, %c0_i32_0 : i32, i32
  }
  func.func @transform_17(%arg0: i32) -> (i32, i32) {
    %c0_i32 = arith.constant 0 : i32
    %c0_i32_0 = arith.constant 0 : i32
    %c0_i32_1 = arith.constant 0 : i32
    return %c0_i32, %c0_i32_0 : i32, i32
  }
  func.func @transform_18(%arg0: i32) -> (i32, i32, i32) {
    %c0_i32 = arith.constant 0 : i32
    %c0_i32_0 = arith.constant 0 : i32
    %c0_i32_1 = arith.constant 0 : i32
    return %arg0, %c0_i32, %c0_i32_0 : i32, i32, i32
  }
}

</mosaic_0001>

<bundles_post_ra>
// kernel: tpu_custom_call.1
= control target key start
LH: loop header
LB: loop body
LE: loop exit
PB: predicated region body
PF: predicated region fallthrough
CT: control target
= control target key end

     0   :  { %s3119_s0 = inlined_call_operand.vmem [shape: f32[2,6,64], index: 0, kind: input, shape index: {}]   ;;  %s3120_s1 = inlined_call_operand.vmem [shape: f32[2,6,16], index: 1, kind: input, shape index: {}]   ;;  %s3121_s2 = inlined_call_operand.vmem [shape: f32[64,32], index: 2, kind: input, shape index: {}]   ;;  %s3122_s3 = inlined_call_operand.vmem [shape: f32[1,32], index: 3, kind: input, shape index: {}]   ;;  %s3123_s4 = inlined_call_operand.hbm [shape: f32[4,32,32], index: 4, kind: input, shape index: {}]   ;;  %s3124_s5 = inlined_call_operand.hbm [shape: f32[1,32], index: 5, kind: input, shape index: {}]   ;;  %s3125_s6 = inlined_call_operand.vmem [shape: f32[32,128], index: 6, kind: input, shape index: {}]   ;;  %s3126_s7 = inlined_call_operand.vmem [shape: f32[32,128], index: 7, kind: input, shape index: {}]   ;;  %s3127_s8 = inlined_call_operand.hbm [shape: f32[1,128], index: 8, kind: input, shape index: {}]   ;;  %s3128_s9 = inlined_call_operand.hbm [shape: f32[16,128], index: 9, kind: input, shape index: {}]   ;;  %s3129_s10 = inlined_call_operand.vmem [shape: f32[32,128], index: 10, kind: input, shape index: {}]   ;;  %s3130_s11 = inlined_call_operand.hbm [shape: f32[1,128], index: 11, kind: input, shape index: {}]   ;;  %s3131_s12 = inlined_call_operand.vmem [shape: f32[32,32], index: 12, kind: input, shape index: {}]   ;;  %s3132_s13 = inlined_call_operand.hbm [shape: f32[32,32], index: 13, kind: input, shape index: {}]   ;;  %s3133_s14 = inlined_call_operand.hbm [shape: f32[16,32], index: 14, kind: input, shape index: {}]   ;;  %s3134_s15 = inlined_call_operand.vmem [shape: f32[1,32], index: 15, kind: input, shape index: {}]   ;;  %s3135_s16 = inlined_call_operand.hbm [shape: f32[32,40], index: 16, kind: input, shape index: {}]   ;;  %s3136_s17 = inlined_call_operand.vmem [shape: f32[1,40], index: 17, kind: input, shape index: {}]   ;;  %s3137_s18 = inlined_call_operand.vmem [shape: f32[2,6,40], index: 18, kind: output, shape index: {}]  }
   0x1   :  { %3139 = sst [smem:[#allocation20_spill]] %s3119_s0 }
   0x2   :  { %3140 = sst [smem:[#allocation21_spill]] %s3120_s1 }
   0x3   :  { %3141 = sst [smem:[#allocation22_spill]] %s3121_s2 }
   0x4   :  { %3142 = sst [smem:[#allocation23_spill]] %s3123_s4 }
   0x5   :  { %3143 = sst [smem:[#allocation24_spill]] %s3124_s5 }
   0x6   :  { %3144 = sst [smem:[#allocation25_spill]] %s3127_s8 }
   0x7   :  { %3145 = sst [smem:[#allocation26_spill]] %s3128_s9 }
   0x8   :  { %23 = vsyncpa [#allocation3], 0 }
   0x9   :  { %24 = vsyncpa [#allocation5], 0 }
   0xa   :  { %25 = vsyncpa [#allocation8], 0 }
   0xb   :  { %26 = vsyncpa [#allocation11], 0 }
   0xc   :  { %27 = vsyncpa [#allocation14], 0  ;;  %s2697_s27 = smov 0  }
   0xd LB: > { %s3146_s5 = sld [smem:[#allocation24_spill]]  ;;  %s2706_s0 = sadd.s32 4294967295, %s2587_s27   ;;  %s2587_s27 = sphi %s2697_s27, %s33_s27  }
   0xe   : > { %p2071_p0 = scmp.ge.s32.totalorder %s2587_s27, 1  ;;  %p452_p1 = scmp.lt.s32.totalorder %s2587_s27, 3 }
   0xf   : > { %p2187_p2 = scmp.eq.s32.totalorder %s2706_s0, 0  ;;  %s2589_s1 = smov [#allocation4]  }
  0x10   : > { %p2711_p3 = pnand %p2071_p0, %p452_p1  ;;  %s486_s20 = sshll.u32 %s2589_s1, 4  ;;  %s487_s20 = int_to_ptr.vmem [resolvable:$true] %s486_s20 }
  0x11   : > { %s3148_s9 = sld [smem:[#allocation26_spill]]  ;;  %s2590_s24 = smov [#allocation7]  }
  0x12   : > { %p2162_p4 = pneg %p2711_p3  ;;  %s515_s25 = sshll.u32 %s2590_s24, 4  ;;  %s516_s25 = int_to_ptr.vmem [resolvable:$true] %s515_s25 }
  0x13   : > { %s484_s30 = sshll.u32 %s3146_s5, 4  ;;  %s545_s29 = sshll.u32 %s3132_s13, 4  ;;  %s485_s30 = int_to_ptr.hbm [resolvable:$true] %s484_s30  ;;  %s546_s29 = int_to_ptr.hbm [resolvable:$true] %s545_s29 }
  0x14   : > { %p2722_p5 = pnand %p2187_p2, %p2162_p4  ;;  %s2591_s1 = smov 128  }
  0x15   : > { %s2592_s21 = smov 8   ;;  %s2593_s22 = smov [#allocation10]  }
  0x16   : > { %2168 = dma.hbm_to_vmem [thread:$0]  (!%p2722_p5), %s485_s30, 16, %s487_s20, [#allocation5]  }
  0x17   : > { %s513_s2 = sshll.u32 %s3148_s9, 4  ;;  %s547_s5 = sshll.u32 %s2593_s22, 4  ;;  %s514_s2 = int_to_ptr.hbm [resolvable:$true] %s513_s2  ;;  %s548_s5 = int_to_ptr.vmem [resolvable:$true] %s547_s5 }
  0x18   : > { %2174 = dma.hbm_to_vmem [thread:$0]  (!%p2722_p5), %s514_s2, 256, %s516_s25, [#allocation8], %s2591_s1, %s2591_s1, %s2592_s21  }
  0x19   : > { %s3150_s4 = sld [smem:[#allocation23_spill]]  ;;  %s2594_s2 = smov [#allocation2]  }
  0x1a   : > { %2180 = dma.hbm_to_vmem [thread:$0]  (!%p2722_p5), %s546_s29, 512, %s548_s5, [#allocation11], %s2591_s1, %s2591_s1, %s2592_s21  }
  0x1b   : > { %s3151_s8 = sld [smem:[#allocation25_spill]]  ;;  %s471_s25 = sshll.u32 %s2594_s2, 4  ;;  %s472_s25 = int_to_ptr.vmem [resolvable:$true] %s471_s25 }
  0x1c   : > { %s2595_s9 = smov [#allocation6]   ;;  %s531_s5 = sshll.u32 %s3130_s11, 4  ;;  %s532_s5 = int_to_ptr.hbm [resolvable:$true] %s531_s5 }
  0x1d   : > { %s504_s22 = sshll.u32 %s2595_s9, 4  ;;  %s559_s20 = sshll.u32 %s3133_s14, 4  ;;  %s505_s22 = int_to_ptr.vmem [resolvable:$true] %s504_s22  ;;  %s560_s20 = int_to_ptr.hbm [resolvable:$true] %s559_s20 }
  0x1e   : > { %s2596_s2 = smov [#allocation9]   ;;  %s576_s24 = sshll.u32 %s3135_s16, 4  ;;  %s577_s24 = int_to_ptr.hbm [resolvable:$true] %s576_s24 }
  0x1f   : > { %s469_s26 = sshll.u32 %s3150_s4, 4  ;;  %s470_s26 = int_to_ptr.hbm [resolvable:$true] %s469_s26 }
  0x20   : > { %2165 = dma.hbm_to_vmem [thread:$0]  (!%p2722_p5), %s470_s26, 2048, %s472_s25, [#allocation3], %s2591_s1, %s2591_s1, %s2592_s21  }
  0x21   : > { %s502_s28 = sshll.u32 %s3151_s8, 4  ;;  %s533_s8 = sshll.u32 %s2596_s2, 4  ;;  %s503_s28 = int_to_ptr.hbm [resolvable:$true] %s502_s28  ;;  %s534_s8 = int_to_ptr.vmem [resolvable:$true] %s533_s8 }
  0x22   : > { %2171 = dma.hbm_to_vmem [thread:$0]  (!%p2722_p5), %s503_s28, 16, %s505_s22, [#allocation5]  }
  0x23   : > { %2177 = dma.hbm_to_vmem [thread:$0]  (!%p2722_p5), %s532_s5, 16, %s534_s8, [#allocation8]  }
  0x24   : > { %s2597_s26 = smov [#allocation12]   ;;  %s2598_s28 = smov [#allocation13]  }
  0x25   : > { %s561_s25 = sshll.u32 %s2597_s26, 4  ;;  %s578_s22 = sshll.u32 %s2598_s28, 4  ;;  %s562_s25 = int_to_ptr.vmem [resolvable:$true] %s561_s25  ;;  %s579_s22 = int_to_ptr.vmem [resolvable:$true] %s578_s22 }
  0x26   : > { %2183 = dma.hbm_to_vmem [thread:$0]  (!%p2722_p5), %s560_s20, 256, %s562_s25, [#allocation11], %s2591_s1, %s2591_s1, %s2592_s21  }
  0x27   : > { %2186 = dma.hbm_to_vmem [thread:$0]  (!%p2722_p5), %s577_s24, 512, %s579_s22, [#allocation14], %s2591_s1, %s2591_s1, %s2592_s21  }
  0x28   : > { %611 = sbr.rel (%p2711_p3) target bundleno = 7118 (0x1bce), region = 92 }
  0x2d   : > { %2566 = dma.done.wait (%p2187_p2), [#allocation3], 2048  }
  0x2e   : > { %2568 = vsyncadd (%p2187_p2), [#allocation3], 4294965248 }
  0x2f   : > { %2570 = dma.done.wait (%p2187_p2), [#allocation5], 32  }
  0x30   : > { %2572 = vsyncadd (%p2187_p2), [#allocation5], 4294967264 }
  0x31   : > { %2574 = dma.done.wait (%p2187_p2), [#allocation8], 272  }
  0x32   : > { %2576 = vsyncadd (%p2187_p2), [#allocation8], 4294967024 }
  0x33   : > { %2578 = dma.done.wait (%p2187_p2), [#allocation11], 768  }
  0x34   : > { %2580 = vsyncadd (%p2187_p2), [#allocation11], 4294966528 }
  0x35   : > { %2582 = dma.done.wait (%p2187_p2), [#allocation14], 512  }
  0x36   : > { %2584 = vsyncadd (%p2187_p2), [#allocation14], 4294966784  ;;  %p703_p6 = scmp.lt.s32.totalorder %s2706_s0, 1  ;;  %s3152_s23 = sld [smem:[#allocation22_spill]]  ;;  %v2811_v3 = vld [vmem:[%s3126_s7 + $0x18] sm:$0xff]  ;;  %v2816_v4 = vld [vmem:[%s3126_s7 + $0x10] sm:$0xff] }
  0x37   : > { %v742_v5 = vld [vmem:[%s3125_s6 + $0x18] sm:$0xff]  ;;  %843 = vmatpush.msra.mxu2 %v2811_v3  ;;  %v741_v7 = vld [vmem:[%s3125_s6 + $0x10] sm:$0xff]  ;;  %v2831_v8 = vld [vmem:[%s3126_s7 + $0x8] sm:$0xff]  ;;  %913 = vmatpush.msra.mxu3 %v2811_v3  ;;  %s3153_s4 = sld [smem:[#allocation20_spill]]  ;;  %v2599_v13 = vmov 0.0   ;;  %vm777_vm0 = vcmask 523264  }
  0x38   : > { %s3156_s0 = smov (!%p703_p6, %s2706_s0), 1  ;;  %820 = vmatpush.msra.mxu1 %v742_v5  ;;  %v2843_v10 = vld [vmem:[%s3126_s7] sm:$0xff]  ;;  %v740_v16 = vld [vmem:[%s3125_s6 + $0x8] sm:$0xff]  ;;  %vm804_vm1 = vcmask 261120   ;;  %s2600_s20 = smov 64   ;;  %vm894_vm14 = vcmask 1040384  }
  0x39   : > { %844 = vmatpush.msra.mxu2 %v2816_v4  ;;  %s2838_s5 = sshll.u32 %s3156_s0, 3  ;;  %914 = vmatpush.msra.mxu3 %v2816_v4  ;;  %v739_v17 = vld [vmem:[%s3125_s6] sm:$0xff]  ;;  %s2601_s2 = smov 32  }
  0x3a   : > { %821 = vmatpush.msra.mxu1 %v741_v7  ;;  %v2224_v18 = vld [vmem:[%s3122_s3] ss:$0 sm:$0xff]  ;;  %v2225_v21 = vld [vmem:[#allocation6] ss:$0 sm:$0xff]  ;;  %s3154_s28 = sld [smem:[#allocation21_spill]]  ;;  %s714_s1 = scalar_lea.vmem %s3137_s18, %s2838_s5 }
  0x3b   : > { %845 = vmatpush.msra.mxu2 %v2831_v8  ;;  %915 = vmatpush.msra.mxu3 %v2831_v8 }
  0x3c   : > { %v722_v0 = vld [vmem:[%s3152_s23 + $0x38] sm:$0xff]  ;;  %v721_v1 = vld [vmem:[%s3152_s23 + $0x30] sm:$0xff]  ;;  %v720_v2 = vld [vmem:[%s3152_s23 + $0x28] sm:$0xff]  ;;  %822 = vmatpush.msra.mxu1 %v740_v16 }
  0x3d   : > { %789 = vmatpush.msra.mxu0 %v722_v0  ;;  %v719_v6 = vld [vmem:[%s3152_s23 + $0x20] sm:$0xff]  ;;  %v718_v9 = vld [vmem:[%s3152_s23 + $0x18] sm:$0xff]  ;;  %v717_v11 = vld [vmem:[%s3152_s23 + $0x10] sm:$0xff]  ;;  %s706_s24 = scalar_lea.vmem %s3153_s4, %s2838_s5  ;;  %846 = vmatpush.msra.mxu2 %v2843_v10 }
  0x3e   : > { %v716_v12 = vld [vmem:[%s3152_s23 + $0x8] sm:$0xff]  ;;  %847 = vmatmul.f32.vlgmr.msra.gmra.mxu2 %v2599_v13  ;;  %v715_v14 = vld [vmem:[%s3152_s23] sm:$0xff]  ;;  %916 = vmatpush.msra.mxu3 %v2843_v10 }
  0x3f   : > { %790 = vmatpush.msra.mxu0 %v721_v1  ;;  %v773_v15 = vld [vmem:[%s706_s24] sm:$0x3f]  ;;  %823 = vmatpush.msra.mxu1 %v739_v17 }
  0x40   : > { %1037 = vmatpush.msrb.mxu3 %v2811_v3  ;;  %s710_s22 = scalar_lea.vmem %s3154_s28, %s2838_s5 }
  0x41   : > { %791 = vmatpush.msra.mxu0 %v720_v2 }
  0x42   : > { %1038 = vmatpush.msrb.mxu3 %v2816_v4 }
  0x43   : > { %792 = vmatpush.msra.mxu0 %v719_v6 }
  0x44   : > { %1039 = vmatpush.msrb.mxu3 %v2831_v8 }
  0x45   : > { %793 = vmatpush.msra.mxu0 %v718_v9 }
  0x46   : > { %1040 = vmatpush.msrb.mxu3 %v2843_v10 }
  0x47   : > { %794 = vmatpush.msra.mxu0 %v717_v11 }
  0x49   : > { %795 = vmatpush.msra.mxu0 %v716_v12 }
  0x4b   : > { %796 = vmatpush.msra.mxu0 %v715_v14 }
  0x4c   : > { %2093 = vmatmul.msk.f32.vlgmr.msra.gmra.mxu0 %vm777_vm0, %v773_v15 }
  0xc1   : > { %v848_v23 = vpop.f32.mrf.mxu2 }
  0xc9   : > { %v798_v19 = vpop.f32.mrf.mxu0 }
  0xca   : > { %v799_v20 = vadd.f32 %v2224_v18, %v798_v19 }
  0xcc   : > { %2094 = vmatmul.msk.f32.vlgmr.msra.gmra.mxu1 %vm804_vm1, %v799_v20 }
 0x149   : > { %v825_v22 = vpop.f32.mrf.mxu1 }
 0x14a   : > { %v2877_v24 = vadd.f32 %v2225_v21, %v825_v22 }
 0x14c   : > { %v851_v25 = vadd.f32 %v848_v23, %v2877_v24 }
 0x14e   : > { %2229 = vtanh.f32 %v851_v25  ;;  %v2095_v27 = vmul.f32 -1.442695, %v851_v25 }
 0x150   : > { %2231 = vpow2.f32 %v2095_v27 }
 0x154   : > { %v2230_v26 = vpop.eup %2229 }
 0x155   : > { %874 = vrot.lane.b32.xlu0 %v2230_v26, %s2600_s20 }
 0x156   : > { %v2232_v28 = vpop.eup %2231 }
 0x157   : > { %v855_v29 = vadd.f32 1.0, %v2232_v28 }
 0x159   : > { %2233 = vrcp.f32 %v855_v29  ;;  %v867_v35 = vand.u32 2147483648, %v855_v29  ;;  %vm861_vm3 = vweird.f32 %v855_v29  ;;  %v865_v36 = vand.u32 2147483647, %v855_v29 }
 0x15b   : > { %v868_v38 = vor.u32 1.1754944e-38, %v867_v35  ;;  %vm866_vm5 = vcmp.eq.f32.partialorder %v865_v36, 8.507059e+37 }
 0x15f   : > { %v2234_v30 = vpop.eup %2233 }
 0x160   : > { %v857_v31 = vmul.f32 %v2234_v30, %v855_v29  ;;  %vm862_vm2 = vweird.f32 %v2234_v30 }
 0x161   : > { %vm863_vm4 = vmor %vm861_vm3, %vm862_vm2 }
 0x162   : > { %v858_v32 = vsub.f32 1.0, %v857_v31 }
 0x164   : > { %v859_v33 = vmul.f32 %v2234_v30, %v858_v32 }
 0x166   : > { %v860_v34 = vadd.f32 %v2234_v30, %v859_v33 }
 0x168   : > { %v864_v37 = vsel %vm863_vm4, %v2234_v30, %v860_v34  ;;  %vm1234_vm4 = vcmask 130048  }
 0x169   : > { %v869_v40 = vsel %vm866_vm5, %v868_v38, %v864_v37 }
 0x16a   : > { %v872_v42 = vmul.f32 0.0, %v869_v40 }
 0x1c7   : > { %v875_v39 = vpop.permute.xlu0 %874 }
 0x1c8   : > { %v877_v41 = vmul.f32 %v875_v39, %v869_v40  ;;  %v730_v39 = vld [vmem:[#allocation2 + $0x38] sm:$0xff] }
 0x1c9   : > { %988 = vmatpush.msrb.mxu1 %v730_v39  ;;  %v748_v39 = vld [vmem:[#allocation7 + $0x8] sm:$0xff] }
 0x1ca   : > { %879 = vrot.lane.b32.xlu0 %v877_v41, %s2601_s2  ;;  %v728_v41 = vld [vmem:[#allocation2 + $0x28] sm:$0xff] }
 0x23c   : > { %v880_v43 = vpop.permute.xlu0 %879 }
 0x23d   : > { %v2882_v44 = vadd.f32 %v880_v43, %v872_v42  ;;  %v727_v42 = vld [vmem:[#allocation2 + $0x20] sm:$0xff] }
 0x23f   : > { %2235 = vtanh.f32 %v2882_v44  ;;  %v890_v6 = vrot.slane %v2882_v44, 7  ;;  %v731_v44 = vld [vmem:[#allocation2 + $0x40] sm:$0xff] }
 0x245   : > { %v2236_v45 = vpop.eup %2235 }
 0x246   : > { %885 = vrot.lane.b32.xlu1 %v2236_v45, %s2600_s20 }
 0x2b8   : > { %v886_v46 = vpop.permute.xlu1 %885 }
 0x2b9   : > { %v2886_v47 = vmul.f32 %v886_v46, %v869_v40  ;;  %v729_v40 = vld [vmem:[#allocation2 + $0x30] sm:$0xff] }
 0x2ba   : > { %989 = vmatpush.msrb.mxu1 %v729_v40  ;;  %v2937_v40 = vld [vmem:[%s3129_s10 + $0x18] sm:$0xff] }
 0x2bb   : > { %897 = vrot.lane.b32.xlu1 %v2886_v47, %s2601_s2 }
 0x2bc   : > { %990 = vmatpush.msrb.mxu1 %v728_v41  ;;  %v760_v41 = vld [vmem:[#allocation10 + $0x18] sm:$0xff] }
 0x2be   : > { %991 = vmatpush.msrb.mxu1 %v727_v42  ;;  %v747_v42 = vld [vmem:[#allocation7] sm:$0xff] }
 0x2c0   : > { %1139 = vmatpush.msra.mxu1 %v2811_v3 }
 0x2c2   : > { %1140 = vmatpush.msra.mxu1 %v2816_v4 }
 0x2c4   : > { %1141 = vmatpush.msra.mxu1 %v2831_v8  ;;  %v734_v8 = vld [vmem:[#allocation2 + $0x58] sm:$0xff] }
 0x2c5   : > { %1114 = vmatpush.msrb.mxu0 %v734_v8 }
 0x2c6   : > { %1142 = vmatpush.msra.mxu1 %v2843_v10 }
 0x32d   : > { %v898_v48 = vpop.permute.xlu1 %897 }
 0x32e   : > { %2096 = vmatmul.msk.f32.vlgmr.msra.gmra.mxu3 %vm804_vm1, %v898_v48 }
 0x32f   : > { %1252 = vmatpush.msra.mxu3 %v748_v39 }
 0x331   : > { %1253 = vmatpush.msra.mxu3 %v747_v42 }
 0x3b1   : > { %v918_v49 = vpop.f32.mrf.mxu3 }
 0x3b2   : > { %v922_v50 = vrot.slane %v918_v49, 7 }
 0x3b4   : > { %v924_v51 = vadd.f32 %v922_v50, %v2877_v24 }
 0x3b6   : > { %2237 = vtanh.f32 %v924_v51  ;;  %v2097_v53 = vmul.f32 -1.442695, %v924_v51 }
 0x3b8   : > { %2239 = vpow2.f32 %v2097_v53 }
 0x3bc   : > { %v2238_v52 = vpop.eup %2237 }
 0x3bd   : > { %948 = vrot.lane.b32.xlu2 %v2238_v52, %s2600_s20 }
 0x3be   : > { %v2240_v54 = vpop.eup %2239 }
 0x3bf   : > { %v928_v55 = vadd.f32 1.0, %v2240_v54 }
 0x3c1   : > { %2241 = vrcp.f32 %v928_v55  ;;  %v940_v61 = vand.u32 2147483648, %v928_v55  ;;  %vm934_vm7 = vweird.f32 %v928_v55  ;;  %v938_v62 = vand.u32 2147483647, %v928_v55 }
 0x3c3   : > { %v941_v0 = vor.u32 1.1754944e-38, %v940_v61  ;;  %vm939_vm9 = vcmp.eq.f32.partialorder %v938_v62, 8.507059e+37 }
 0x3c7   : > { %v2242_v56 = vpop.eup %2241 }
 0x3c8   : > { %v930_v57 = vmul.f32 %v2242_v56, %v928_v55  ;;  %vm935_vm6 = vweird.f32 %v2242_v56 }
 0x3c9   : > { %vm936_vm8 = vmor %vm934_vm7, %vm935_vm6 }
 0x3ca   : > { %v931_v58 = vsub.f32 1.0, %v930_v57  ;;  %v732_v57 = vld [vmem:[#allocation2 + $0x48] sm:$0xff] }
 0x3cc   : > { %v932_v59 = vmul.f32 %v2242_v56, %v931_v58 }
 0x3ce   : > { %v933_v60 = vadd.f32 %v2242_v56, %v932_v59 }
 0x3d0   : > { %v937_v63 = vsel %vm936_vm8, %v2242_v56, %v933_v60  ;;  %v733_v56 = vld [vmem:[#allocation2 + $0x50] sm:$0xff] }
 0x3d1   : > { %v942_v2 = vsel %vm939_vm9, %v941_v0, %v937_v63  ;;  %1115 = vmatpush.msrb.mxu0 %v733_v56 }
 0x3d2   : > { %v946_v7 = vmul.f32 %v942_v2, %v890_v6 }
 0x3d3   : > { %1116 = vmatpush.msrb.mxu0 %v732_v57 }
 0x3d5   : > { %1117 = vmatpush.msrb.mxu0 %v731_v44 }
 0x417   : > { %v949_v1 = vpop.permute.xlu2 %948 }
 0x418   : > { %v951_v5 = vmul.f32 %v949_v1, %v942_v2 }
 0x41a   : > { %953 = vrot.lane.b32.xlu2 %v951_v5, %s2601_s2 }
 0x474   : > { %v954_v9 = vpop.permute.xlu2 %953 }
 0x475   : > { %v956_v11 = vadd.f32 %v954_v9, %v946_v7 }
 0x477   : > { %2243 = vtanh.f32 %v956_v11  ;;  %v1069_v43 = vrot.slane %v956_v11, 7 }
 0x47d   : > { %v2244_v12 = vpop.eup %2243 }
 0x47e   : > { %959 = vrot.lane.b32.xlu0 %v2244_v12, %s2600_s20 }
 0x4f0   : > { %v960_v13 = vpop.permute.xlu0 %959 }
 0x4f1   : > { %v962_v14 = vmul.f32 %v960_v13, %v942_v2 }
 0x4f3   : > { %v964_v15 = vrot.slane %v962_v14, 1 }
 0x4f5   : > { %1021 = vrot.lane.b32.xlu1 %v964_v15, %s2601_s2 }
 0x4fd   : > { %967 = vrot.lane.b32.xlu1 %v956_v11, %s2600_s20 }
 0x567   : > { %v1022_v16 = vpop.permute.xlu1 %1021 }
 0x568   : > { %2100 = vmatmul.msk.f32.vlgmr.msrb.gmra.mxu3 %vm804_vm1, %v1022_v16 }
 0x56f   : > { %v968_v37 = vpop.permute.xlu1 %967 }
 0x570   : > { %v970_v38 = vsel %vm894_vm14, %v964_v15, %v968_v37 }
 0x5eb   : > { %v1042_v17 = vpop.f32.mrf.mxu3 }
 0x5ec   : > { %v1046_v18 = vrot.slane %v1042_v17, 6 }
 0x5ee   : > { %v1048_v19 = vadd.f32 %v1046_v18, %v2877_v24 }
 0x5f0   : > { %2245 = vtanh.f32 %v1048_v19  ;;  %v2101_v21 = vmul.f32 -1.442695, %v1048_v19 }
 0x5f2   : > { %2247 = vpow2.f32 %v2101_v21 }
 0x5f6   : > { %v2246_v20 = vpop.eup %2245 }
 0x5f7   : > { %1073 = vrot.lane.b32.xlu2 %v2246_v20, %s2600_s20 }
 0x5f8   : > { %v2248_v22 = vpop.eup %2247 }
 0x5f9   : > { %v1052_v23 = vadd.f32 1.0, %v2248_v22 }
 0x5fb   : > { %2249 = vrcp.f32 %v1052_v23  ;;  %v1064_v30 = vand.u32 2147483648, %v1052_v23  ;;  %vm1058_vm11 = vweird.f32 %v1052_v23  ;;  %v1062_v31 = vand.u32 2147483647, %v1052_v23 }
 0x5fd   : > { %v1065_v33 = vor.u32 1.1754944e-38, %v1064_v30  ;;  %vm1063_vm13 = vcmp.eq.f32.partialorder %v1062_v31, 8.507059e+37  ;;  %v738_v30 = vld [vmem:[#allocation2 + $0x78] sm:$0xff]  ;;  %v737_v31 = vld [vmem:[#allocation2 + $0x70] sm:$0xff] }
 0x601   : > { %v2250_v25 = vpop.eup %2249 }
 0x602   : > { %v1054_v26 = vmul.f32 %v2250_v25, %v1052_v23  ;;  %vm1059_vm10 = vweird.f32 %v2250_v25 }
 0x603   : > { %vm1060_vm12 = vmor %vm1058_vm11, %vm1059_vm10 }
 0x604   : > { %v1055_v27 = vsub.f32 1.0, %v1054_v26  ;;  %v726_v26 = vld [vmem:[#allocation2 + $0x18] sm:$0xff] }
 0x605   : > { %1013 = vmatpush.msrb.mxu2 %v726_v26  ;;  %v2996_v26 = vld [vmem:[%s3131_s12 + $0x10] sm:$0xff] }
 0x606   : > { %v1056_v28 = vmul.f32 %v2250_v25, %v1055_v27  ;;  %v725_v27 = vld [vmem:[#allocation2 + $0x10] sm:$0xff] }
 0x607   : > { %1014 = vmatpush.msrb.mxu2 %v725_v27  ;;  %v3003_v27 = vld [vmem:[%s3131_s12 + $0x8] sm:$0xff] }
 0x608   : > { %v1057_v29 = vadd.f32 %v2250_v25, %v1056_v28  ;;  %v724_v28 = vld [vmem:[#allocation2 + $0x8] sm:$0xff] }
 0x609   : > { %1015 = vmatpush.msrb.mxu2 %v724_v28  ;;  %v3010_v28 = vld [vmem:[%s3131_s12] sm:$0xff] }
 0x60a   : > { %v1061_v32 = vsel %vm1060_vm12, %v2250_v25, %v1057_v29  ;;  %v723_v29 = vld [vmem:[#allocation2] sm:$0xff] }
 0x60b   : > { %v1066_v35 = vsel %vm1063_vm13, %v1065_v33, %v1061_v32  ;;  %1016 = vmatpush.msrb.mxu2 %v723_v29  ;;  %v736_v32 = vld [vmem:[#allocation2 + $0x68] sm:$0xff]  ;;  %v735_v33 = vld [vmem:[#allocation2 + $0x60] sm:$0xff] }
 0x60c   : > { %v1071_v45 = vmul.f32 %v1069_v43, %v1066_v35  ;;  %v2943_v43 = vld [vmem:[%s3129_s10 + $0x10] sm:$0xff] }
 0x60d   : > { %1216 = vmatpush.msra.mxu2 %v738_v30 }
 0x60f   : > { %1217 = vmatpush.msra.mxu2 %v737_v31  ;;  %v762_v31 = vld [vmem:[#allocation12 + $0x8] sm:$0xff] }
 0x610   : > { %1272 = vmatpush.msra.mxu0 %v762_v31 }
 0x611   : > { %1218 = vmatpush.msra.mxu2 %v736_v32  ;;  %v761_v32 = vld [vmem:[#allocation12] sm:$0xff] }
 0x612   : > { %1273 = vmatpush.msra.mxu0 %v761_v32 }
 0x613   : > { %1219 = vmatpush.msra.mxu2 %v735_v33 }
 0x651   : > { %v1074_v34 = vpop.permute.xlu2 %1073 }
 0x652   : > { %v1076_v36 = vmul.f32 %v1074_v34, %v1066_v35 }
 0x654   : > { %1078 = vrot.lane.b32.xlu0 %v1076_v36, %s2601_s2 }
 0x65c   : > { %972 = vrot.lane.b32.xlu0 %v970_v38, %s2601_s2 }
 0x6c6   : > { %v1079_v46 = vpop.permute.xlu0 %1078 }
 0x6c7   : > { %v1081_v48 = vadd.f32 %v1079_v46, %v1071_v45  ;;  %v759_v46 = vld [vmem:[#allocation10 + $0x10] sm:$0xff] }
 0x6c9   : > { %2251 = vtanh.f32 %v1081_v48  ;;  %v1092_v4 = vrot.slane %v1081_v48, 1  ;;  %v1171_v18 = vrot.slane %v1081_v48, 7  ;;  %v2954_v48 = vld [vmem:[%s3129_s10 + $0x8] sm:$0xff] }
 0x6ce   : > { %v973_v49 = vpop.permute.xlu0 %972 }
 0x6cf   : > { %v2252_v50 = vpop.eup %2251  ;;  %2098 = vmatmul.msk.f32.vlgmr.msrb.gmra.mxu1 %vm804_vm1, %v973_v49  ;;  %v758_v49 = vld [vmem:[#allocation10 + $0x8] sm:$0xff] }
 0x6d0   : > { %1084 = vrot.lane.b32.xlu2 %v2252_v50, %s2600_s20  ;;  %1293 = vmatpush.msrb.mxu1 %v760_v41  ;;  %v2957_v50 = vld [vmem:[%s710_s22] sm:$0x3f] }
 0x6d1   : > { %2106 = vmatmul.msk.f32.vlgmr.msra.gmra.mxu3 %vm1234_vm4, %v2957_v50 }
 0x6d2   : > { %1294 = vmatpush.msrb.mxu1 %v759_v46 }
 0x6d4   : > { %1295 = vmatpush.msrb.mxu1 %v758_v49 }
 0x72a   : > { %v1085_v51 = vpop.permute.xlu2 %1084 }
 0x72b   : > { %v1087_v52 = vmul.f32 %v1085_v51, %v1066_v35  ;;  %v2964_v51 = vld [vmem:[%s3129_s10] sm:$0xff] }
 0x72d   : > { %v1089_v3 = vrot.slane %v1087_v52, 2  ;;  %v757_v52 = vld [vmem:[#allocation10] sm:$0xff] }
 0x72e   : > { %1296 = vmatpush.msrb.mxu1 %v757_v52 }
 0x72f   : > { %1123 = vrot.lane.b32.xlu1 %v1089_v3, %s2601_s2 }
 0x737   : > { %891 = vrot.lane.b32.xlu1 %v890_v6, %s2600_s20 }
 0x73f   : > { %1093 = vrot.lane.b32.xlu1 %v1092_v4, %s2600_s20 }
 0x74c   : > { %v2920_v58 = vpop.f32.mrf.mxu1 }
 0x7a1   : > { %v1124_v10 = vpop.permute.xlu1 %1123 }
 0x7a2   : > { %2103 = vmatmul.msk.f32.vlgmr.msra.gmra.mxu1 %vm804_vm1, %v1124_v10 }
 0x7a9   : > { %v892_v53 = vpop.permute.xlu1 %891 }
 0x7aa   : > { %v895_v25 = vsel %vm894_vm14, %v2886_v47, %v892_v53  ;;  %v2226_v53 = vld [vmem:[#allocation4] ss:$0 sm:$0xff] }
 0x7b1   : > { %v1094_v54 = vpop.permute.xlu1 %1093 }
 0x7b2   : > { %v1096_v55 = vsel %vm894_vm14, %v1089_v3, %v1094_v54  ;;  %v768_v54 = vld [vmem:[#allocation4] sm:$0x1] }
 0x7b3   : > { %1098 = vrot.lane.b32.xlu1 %v1096_v55, %s2601_s2 }
 0x81f   : > { %v1144_v59 = vpop.f32.mrf.mxu1 }
 0x820   : > { %v1148_v60 = vrot.slane %v1144_v59, 5 }
 0x822   : > { %v1150_v61 = vadd.f32 %v1148_v60, %v2877_v24  ;;  %v1255_v60 = vpop.f32.mrf.mxu3 }
 0x824   : > { %2253 = vtanh.f32 %v1150_v61  ;;  %v2104_v0 = vmul.f32 -1.442695, %v1150_v61 }
 0x825   : > { %v1099_v62 = vpop.permute.xlu1 %1098 }
 0x826   : > { %2102 = vmatmul.msk.f32.vlgmr.msrb.gmra.mxu0 %vm804_vm1, %v1099_v62  ;;  %2255 = vpow2.f32 %v2104_v0 }
 0x827   : > { %1406 = vmatpush.msrb.mxu0 %v2937_v40 }
 0x829   : > { %1407 = vmatpush.msrb.mxu0 %v2943_v43 }
 0x82a   : > { %v2254_v63 = vpop.eup %2253 }
 0x82b   : > { %1175 = vrot.lane.b32.xlu2 %v2254_v63, %s2600_s20  ;;  %1408 = vmatpush.msrb.mxu0 %v2954_v48 }
 0x82c   : > { %v2256_v1 = vpop.eup %2255 }
 0x82d   : > { %v1154_v2 = vadd.f32 1.0, %v2256_v1  ;;  %1409 = vmatpush.msrb.mxu0 %v2964_v51 }
 0x82e   : > { %2107 = vmatmul.msk.f32.vlgmr.msra.gmra.mxu0 %vm1234_vm4, %v2957_v50 }
 0x82f   : > { %2257 = vrcp.f32 %v1154_v2  ;;  %v1166_v12 = vand.u32 2147483648, %v1154_v2  ;;  %vm1160_vm0 = vweird.f32 %v1154_v2  ;;  %v1164_v24 = vand.u32 2147483647, %v1154_v2  ;;  %1601 = vmatpush.msra.mxu0 %v2937_v40 }
 0x831   : > { %v1167_v14 = vor.u32 1.1754944e-38, %v1166_v12  ;;  %vm1165_vm3 = vcmp.eq.f32.partialorder %v1164_v24, 8.507059e+37  ;;  %1602 = vmatpush.msra.mxu0 %v2943_v43 }
 0x833   : > { %1603 = vmatpush.msra.mxu0 %v2954_v48 }
 0x835   : > { %v2258_v5 = vpop.eup %2257  ;;  %1604 = vmatpush.msra.mxu0 %v2964_v51 }
 0x836   : > { %v1156_v6 = vmul.f32 %v2258_v5, %v1154_v2  ;;  %vm1161_vm15 = vweird.f32 %v2258_v5 }
 0x837   : > { %vm1162_vm2 = vmor %vm1160_vm0, %vm1161_vm15 }
 0x838   : > { %v1157_v7 = vsub.f32 1.0, %v1156_v6 }
 0x83a   : > { %v1158_v9 = vmul.f32 %v2258_v5, %v1157_v7 }
 0x83c   : > { %v1159_v11 = vadd.f32 %v2258_v5, %v1158_v9 }
 0x83e   : > { %v1163_v13 = vsel %vm1162_vm2, %v2258_v5, %v1159_v11 }
 0x83f   : > { %v1168_v16 = vsel %vm1165_vm3, %v1167_v14, %v1163_v13  ;;  %vm1889_vm3 = vcmask 1041408  }
 0x840   : > { %v1173_v19 = vmul.f32 %v1171_v18, %v1168_v16 }
 0x885   : > { %v1176_v15 = vpop.permute.xlu2 %1175 }
 0x886   : > { %v1178_v17 = vmul.f32 %v1176_v15, %v1168_v16 }
 0x888   : > { %1180 = vrot.lane.b32.xlu0 %v1178_v17, %s2601_s2 }
 0x8a3   : > { %v1119_v8 = vpop.f32.mrf.mxu0 }
 0x8fa   : > { %v1181_v20 = vpop.permute.xlu0 %1180 }
 0x8fb   : > { %v1183_v21 = vadd.f32 %v1181_v20, %v1173_v19 }
 0x8fd   : > { %2259 = vtanh.f32 %v1183_v21  ;;  %v1194_v22 = vrot.slane %v1183_v21, 2 }
 0x8ff   : > { %1195 = vrot.lane.b32.xlu0 %v1194_v22, %s2600_s20 }
 0x903   : > { %v2260_v23 = vpop.eup %2259 }
 0x904   : > { %1186 = vrot.lane.b32.xlu2 %v2260_v23, %s2600_s20 }
 0x90c   : > { %997 = vrot.lane.b32.xlu2 %v895_v25, %s2601_s2  ;;  %v2991_v25 = vld [vmem:[%s3131_s12 + $0x18] sm:$0xff] }
 0x90d   : > { %1381 = vmatpush.msrb.mxu3 %v2991_v25  ;;  %1476 = vmatpush.msra.mxu1 %v2991_v25 }
 0x90f   : > { %1382 = vmatpush.msrb.mxu3 %v2996_v26  ;;  %1477 = vmatpush.msra.mxu1 %v2996_v26 }
 0x911   : > { %1383 = vmatpush.msrb.mxu3 %v3003_v27  ;;  %1478 = vmatpush.msra.mxu1 %v3003_v27 }
 0x913   : > { %1384 = vmatpush.msrb.mxu3 %v3010_v28  ;;  %1479 = vmatpush.msra.mxu1 %v3010_v28 }
 0x915   : > { %1574 = vmatpush.msra.mxu3 %v2991_v25 }
 0x917   : > { %1575 = vmatpush.msra.mxu3 %v2996_v26 }
 0x919   : > { %1576 = vmatpush.msra.mxu3 %v3003_v27 }
 0x91b   : > { %1577 = vmatpush.msra.mxu3 %v3010_v28 }
 0x95e   : > { %v1187_v34 = vpop.permute.xlu2 %1186 }
 0x95f   : > { %v1189_v35 = vmul.f32 %v1187_v34, %v1168_v16  ;;  %v771_v34 = vld [vmem:[%s3134_s15] sm:$0x1] }
 0x961   : > { %v1191_v36 = vrot.slane %v1189_v35, 3 }
 0x966   : > { %v998_v47 = vpop.permute.xlu2 %997 }
 0x967   : > { %2099 = vmatmul.msk.f32.vlgmr.msrb.gmra.mxu2 %vm804_vm1, %v998_v47 }
 0x968   : > { %1313 = vmatpush.msrb.mxu2 %v2937_v40 }
 0x96a   : > { %1314 = vmatpush.msrb.mxu2 %v2943_v43 }
 0x96c   : > { %1315 = vmatpush.msrb.mxu2 %v2954_v48 }
 0x96e   : > { %1316 = vmatpush.msrb.mxu2 %v2964_v51 }
 0x971   : > { %v1196_v37 = vpop.permute.xlu0 %1195 }
 0x972   : > { %v1198_v38 = vsel %vm894_vm14, %v1191_v36, %v1196_v37  ;;  %v3045_v37 = vpop.f32.mrf.mxu0 }
 0x973   : > { %1200 = vrot.lane.b32.xlu0 %v1198_v38, %s2601_s2 }
 0x9e5   : > { %v1201_v45 = vpop.permute.xlu0 %1200 }
 0x9e6   : > { %2105 = vmatmul.msk.f32.vlgmr.msra.gmra.mxu2 %vm804_vm1, %v1201_v45 }
 0x9e7   : > { %1504 = vmatpush.msra.mxu2 %v2937_v40 }
 0x9e9   : > { %1505 = vmatpush.msra.mxu2 %v2943_v43 }
 0x9ea   : > { %v1018_v3 = vpop.f32.mrf.mxu2 }
 0x9eb   : > { %1506 = vmatpush.msra.mxu2 %v2954_v48  ;;  %v1019_v4 = vadd.f32 %v1018_v3, %v2920_v58  ;;  %v2227_v58 = vld [vmem:[#allocation9] ss:$0 sm:$0xff] }
 0x9ec   : > { %v2979_v61 = vadd.f32 %v2227_v58, %v1255_v60 }
 0x9ed   : > { %1507 = vmatpush.msra.mxu2 %v2964_v51  ;;  %v1122_v10 = vadd.f32 %v1119_v8, %v1019_v4 }
 0xa69   : > { %v1221_v55 = vpop.f32.mrf.mxu2 }
 0xa6a   : > { %v1224_v56 = vadd.f32 %v1221_v55, %v1122_v10 }
 0xa6c   : > { %v1225_v57 = vadd.f32 %v1224_v56, %v768_v54  ;;  %v1229_v44 = vadd.f32 %v2226_v53, %v1224_v56 }
 0xa6e   : > { %v1343_v59 = vrot.slane %v1229_v44, 1  ;;  %2108 = vmatmul.msk.f32.vlgmr.msrb.gmra.mxu1 %vm804_vm1, %v1225_v57  ;;  %2109 = vmatmul.msk.f32.vlgmr.msrb.gmra.mxu2 %vm804_vm1, %v1225_v57 }
 0xa6f   : > { %1698 = vmatpush.msrb.mxu2 %v2937_v40  ;;  %1671 = vmatpush.msrb.mxu1 %v2991_v25 }
 0xa70   : > { %1344 = vrot.lane.b32.xlu0 %v1343_v59, %s2601_s2 }
 0xa71   : > { %1699 = vmatpush.msrb.mxu2 %v2943_v43  ;;  %1672 = vmatpush.msrb.mxu1 %v2996_v26 }
 0xa73   : > { %1700 = vmatpush.msrb.mxu2 %v2954_v48  ;;  %1673 = vmatpush.msrb.mxu1 %v3003_v27 }
 0xa75   : > { %1701 = vmatpush.msrb.mxu2 %v2964_v51  ;;  %1674 = vmatpush.msrb.mxu1 %v3010_v28 }
 0xae2   : > { %v1345_v19 = vpop.permute.xlu0 %1344 }
 0xaeb   : > { %v1298_v47 = vpop.f32.mrf.mxu1 }
 0xaec   : > { %v3043_v35 = vadd.f32 %v1298_v47, %v771_v34 }
 0xaf1   : > { %v1318_v62 = vpop.f32.mrf.mxu2 }
 0xaf2   : > { %v1321_v63 = vadd.f32 %v1318_v62, %v2979_v61 }
 0xaf4   : > { %2261 = vtanh.f32 %v1321_v63  ;;  %v2110_v1 = vmul.f32 -1.442695, %v1321_v63 }
 0xaf6   : > { %2263 = vpow2.f32 %v2110_v1 }
 0xafa   : > { %v2262_v0 = vpop.eup %2261 }
 0xafb   : > { %1349 = vrot.lane.b32.xlu2 %v2262_v0, %s2600_s20 }
 0xafc   : > { %v2264_v2 = vpop.eup %2263 }
 0xafd   : > { %v1325_v5 = vadd.f32 1.0, %v2264_v2 }
 0xaff   : > { %2265 = vrcp.f32 %v1325_v5  ;;  %v1337_v24 = vand.u32 2147483648, %v1325_v5  ;;  %vm1331_vm6 = vweird.f32 %v1325_v5  ;;  %v1335_v13 = vand.u32 2147483647, %v1325_v5 }
 0xb01   : > { %v1338_v15 = vor.u32 1.1754944e-38, %v1337_v24  ;;  %vm1336_vm8 = vcmp.eq.f32.partialorder %v1335_v13, 8.507059e+37 }
 0xb05   : > { %v2266_v6 = vpop.eup %2265 }
 0xb06   : > { %v1327_v7 = vmul.f32 %v2266_v6, %v1325_v5  ;;  %vm1332_vm5 = vweird.f32 %v2266_v6 }
 0xb07   : > { %vm1333_vm7 = vmor %vm1331_vm6, %vm1332_vm5 }
 0xb08   : > { %v1328_v9 = vsub.f32 1.0, %v1327_v7  ;;  %v1485_v7 = vrot.slane %v3045_v37, 1 }
 0xb0a   : > { %v1329_v11 = vmul.f32 %v2266_v6, %v1328_v9 }
 0xb0c   : > { %v1330_v12 = vadd.f32 %v2266_v6, %v1329_v11 }
 0xb0e   : > { %v1334_v14 = vsel %vm1333_vm7, %v2266_v6, %v1330_v12  ;;  %vm1891_vm7 = vcmask 1042432  }
 0xb0f   : > { %v1339_v17 = vsel %vm1336_vm8, %v1338_v15, %v1334_v14 }
 0xb10   : > { %v1347_v20 = vmul.f32 %v1345_v19, %v1339_v17 }
 0xb55   : > { %v1350_v16 = vpop.permute.xlu2 %1349 }
 0xb56   : > { %v1352_v18 = vmul.f32 %v1350_v16, %v1339_v17 }
 0xb58   : > { %1354 = vrot.lane.b32.xlu1 %v1352_v18, %s2601_s2 }
 0xbca   : > { %v1355_v21 = vpop.permute.xlu1 %1354 }
 0xbcb   : > { %v2984_v22 = vadd.f32 %v1355_v21, %v1347_v20 }
 0xbcd   : > { %2267 = vtanh.f32 %v2984_v22  ;;  %v1439_v44 = vrot.slane %v2984_v22, 7 }
 0xbd3   : > { %v2268_v23 = vpop.eup %2267 }
 0xbd4   : > { %1360 = vrot.lane.b32.xlu2 %v2268_v23, %s2600_s20 }
 0xc2e   : > { %v1361_v29 = vpop.permute.xlu2 %1360 }
 0xc2f   : > { %v1363_v30 = vmul.f32 %v1361_v29, %v1339_v17 }
 0xc31   : > { %1365 = vrot.lane.b32.xlu0 %v1363_v30, %s2601_s2 }
 0xca3   : > { %v1366_v33 = vpop.permute.xlu0 %1365 }
 0xca4   : > { %2111 = vmatmul.msk.f32.vlgmr.msrb.gmra.mxu3 %vm804_vm1, %v1366_v33 }
 0xca5   : > { %1768 = vmatpush.msrb.mxu3 %v2991_v25 }
 0xca7   : > { %1769 = vmatpush.msrb.mxu3 %v2996_v26 }
 0xca9   : > { %1770 = vmatpush.msrb.mxu3 %v3003_v27 }
 0xcab   : > { %1771 = vmatpush.msrb.mxu3 %v3010_v28 }
 0xd27   : > { %v1386_v36 = vpop.f32.mrf.mxu3 }
 0xd28   : > { %v1387_v38 = vadd.f32 %v1386_v36, %v3043_v35 }
 0xd2a   : > { %v1389_v39 = vadd.f32 %v1387_v38, %v3045_v37 }
 0xd2c   : > { %2269 = vtanh.f32 %v1389_v39 }
 0xd32   : > { %v3049_v41 = vpop.eup %2269 }
 0xd33   : > { %2112 = vmatmul.msk.f32.vlgmr.msrb.gmra.mxu0 %vm804_vm1, %v3049_v41 }
 0xd34   : > { %1795 = vmatpush.msrb.mxu0 %v2937_v40 }
 0xd36   : > { %1796 = vmatpush.msrb.mxu0 %v2943_v43 }
 0xd38   : > { %1797 = vmatpush.msrb.mxu0 %v2954_v48 }
 0xd3a   : > { %1798 = vmatpush.msrb.mxu0 %v2964_v51 }
 0xdb0   : > { %v1411_v42 = vpop.f32.mrf.mxu0 }
 0xdb1   : > { %v1415_v45 = vrot.slane %v1411_v42, 7 }
 0xdb3   : > { %v1417_v46 = vadd.f32 %v1415_v45, %v2979_v61 }
 0xdb5   : > { %2271 = vtanh.f32 %v1417_v46  ;;  %v2113_v50 = vmul.f32 -1.442695, %v1417_v46 }
 0xdb7   : > { %2273 = vpow2.f32 %v2113_v50 }
 0xdbb   : > { %v2272_v49 = vpop.eup %2271 }
 0xdbc   : > { %1443 = vrot.lane.b32.xlu1 %v2272_v49, %s2600_s20  ;;  %v1582_v49 = vrot.slane %v3045_v37, 2 }
 0xdbd   : > { %v2274_v52 = vpop.eup %2273 }
 0xdbe   : > { %v1421_v3 = vadd.f32 1.0, %v2274_v52 }
 0xdc0   : > { %2275 = vrcp.f32 %v1421_v3  ;;  %v1433_v51 = vand.u32 2147483648, %v1421_v3  ;;  %vm1427_vm10 = vweird.f32 %v1421_v3  ;;  %v1431_v10 = vand.u32 2147483647, %v1421_v3 }
 0xdc2   : > { %v1434_v54 = vor.u32 1.1754944e-38, %v1433_v51  ;;  %vm1432_vm12 = vcmp.eq.f32.partialorder %v1431_v10, 8.507059e+37 }
 0xdc6   : > { %v2276_v40 = vpop.eup %2275 }
 0xdc7   : > { %v1423_v4 = vmul.f32 %v2276_v40, %v1421_v3  ;;  %vm1428_vm9 = vweird.f32 %v2276_v40 }
 0xdc8   : > { %vm1429_vm11 = vmor %vm1427_vm10, %vm1428_vm9 }
 0xdc9   : > { %v1424_v43 = vsub.f32 1.0, %v1423_v4 }
 0xdcb   : > { %v1425_v8 = vmul.f32 %v2276_v40, %v1424_v43 }
 0xdcd   : > { %v1426_v48 = vadd.f32 %v2276_v40, %v1425_v8 }
 0xdcf   : > { %v1430_v53 = vsel %vm1429_vm11, %v2276_v40, %v1426_v48 }
 0xdd0   : > { %v1435_v56 = vsel %vm1432_vm12, %v1434_v54, %v1430_v53  ;;  %vm1893_vm12 = vcmask 1043456  }
 0xdd1   : > { %v1441_v59 = vmul.f32 %v1439_v44, %v1435_v56 }
 0xe2e   : > { %v1444_v55 = vpop.permute.xlu1 %1443 }
 0xe2f   : > { %v1446_v57 = vmul.f32 %v1444_v55, %v1435_v56 }
 0xe31   : > { %1448 = vrot.lane.b32.xlu2 %v1446_v57, %s2601_s2 }
 0xe8b   : > { %v1449_v58 = vpop.permute.xlu2 %1448 }
 0xe8c   : > { %v1451_v60 = vadd.f32 %v1449_v58, %v1441_v59 }
 0xe8e   : > { %2277 = vtanh.f32 %v1451_v60  ;;  %v1537_v31 = vrot.slane %v1451_v60, 7 }
 0xe94   : > { %v2278_v62 = vpop.eup %2277 }
 0xe95   : > { %1454 = vrot.lane.b32.xlu0 %v2278_v62, %s2600_s20 }
 0xf07   : > { %v1455_v63 = vpop.permute.xlu0 %1454 }
 0xf08   : > { %v1457_v0 = vmul.f32 %v1455_v63, %v1435_v56 }
 0xf0a   : > { %v1459_v1 = vrot.slane %v1457_v0, 1 }
 0xf0c   : > { %1460 = vrot.lane.b32.xlu1 %v1459_v1, %s2601_s2 }
 0xf7e   : > { %v1461_v2 = vpop.permute.xlu1 %1460 }
 0xf7f   : > { %2114 = vmatmul.msk.f32.vlgmr.msra.gmra.mxu1 %vm804_vm1, %v1461_v2 }
 0xf80   : > { %1865 = vmatpush.msra.mxu1 %v2991_v25 }
 0xf82   : > { %1866 = vmatpush.msra.mxu1 %v2996_v26 }
 0xf84   : > { %1867 = vmatpush.msra.mxu1 %v3003_v27 }
 0xf86   : > { %1868 = vmatpush.msra.mxu1 %v3010_v28 }
 0xffc   : > { %v1481_v5 = vpop.f32.mrf.mxu1 }
 0xffd   : > { %v1482_v6 = vadd.f32 %v1481_v5, %v3043_v35 }
 0xfff   : > { %v1487_v9 = vadd.f32 %v1485_v7, %v1482_v6 }
0x1001   : > { %2279 = vtanh.f32 %v1487_v9 }
0x1007   : > { %v2280_v11 = vpop.eup %2279 }
0x1008   : > { %2115 = vmatmul.msk.f32.vlgmr.msra.gmra.mxu2 %vm804_vm1, %v2280_v11  ;;  %v1877_v52 = vrot.slane %v2280_v11, 7 }
0x100a   : > { %v1888_v4 = vsel %vm894_vm14, %v3049_v41, %v1877_v52 }
0x108b   : > { %v1509_v12 = vpop.f32.mrf.mxu2 }
0x108c   : > { %v1513_v24 = vrot.slane %v1509_v12, 6 }
0x108e   : > { %v1515_v13 = vadd.f32 %v1513_v24, %v2979_v61 }
0x1090   : > { %2281 = vtanh.f32 %v1515_v13  ;;  %v2116_v15 = vmul.f32 -1.442695, %v1515_v13 }
0x1092   : > { %2283 = vpow2.f32 %v2116_v15 }
0x1096   : > { %v2282_v14 = vpop.eup %2281 }
0x1097   : > { %1541 = vrot.lane.b32.xlu2 %v2282_v14, %s2600_s20 }
0x1098   : > { %v2284_v16 = vpop.eup %2283 }
0x1099   : > { %v1519_v17 = vadd.f32 1.0, %v2284_v16 }
0x109b   : > { %2285 = vrcp.f32 %v1519_v17  ;;  %v1531_v23 = vand.u32 2147483648, %v1519_v17  ;;  %vm1525_vm15 = vweird.f32 %v1519_v17  ;;  %v1529_v25 = vand.u32 2147483647, %v1519_v17 }
0x109d   : > { %v1532_v27 = vor.u32 1.1754944e-38, %v1531_v23  ;;  %vm1530_vm2 = vcmp.eq.f32.partialorder %v1529_v25, 8.507059e+37 }
0x10a1   : > { %v2286_v18 = vpop.eup %2285 }
0x10a2   : > { %v1521_v19 = vmul.f32 %v2286_v18, %v1519_v17  ;;  %vm1526_vm13 = vweird.f32 %v2286_v18  ;;  %v1679_v17 = vrot.slane %v3045_v37, 3 }
0x10a3   : > { %vm1527_vm0 = vmor %vm1525_vm15, %vm1526_vm13 }
0x10a4   : > { %v1522_v20 = vsub.f32 1.0, %v1521_v19 }
0x10a6   : > { %v1523_v21 = vmul.f32 %v2286_v18, %v1522_v20 }
0x10a8   : > { %v1524_v22 = vadd.f32 %v2286_v18, %v1523_v21 }
0x10aa   : > { %v1528_v26 = vsel %vm1527_vm0, %v2286_v18, %v1524_v22 }
0x10ab   : > { %v1533_v29 = vsel %vm1530_vm2, %v1532_v27, %v1528_v26 }
0x10ac   : > { %v1539_v32 = vmul.f32 %v1537_v31, %v1533_v29 }
0x10f1   : > { %v1542_v28 = vpop.permute.xlu2 %1541 }
0x10f2   : > { %v1544_v30 = vmul.f32 %v1542_v28, %v1533_v29 }
0x10f4   : > { %1546 = vrot.lane.b32.xlu0 %v1544_v30, %s2601_s2 }
0x1166   : > { %v1547_v33 = vpop.permute.xlu0 %1546 }
0x1167   : > { %v1549_v34 = vadd.f32 %v1547_v33, %v1539_v32 }
0x1169   : > { %2287 = vtanh.f32 %v1549_v34  ;;  %v1634_v5 = vrot.slane %v1549_v34, 7 }
0x116f   : > { %v2288_v47 = vpop.eup %2287 }
0x1170   : > { %1552 = vrot.lane.b32.xlu1 %v2288_v47, %s2600_s20 }
0x11e2   : > { %v1553_v36 = vpop.permute.xlu1 %1552 }
0x11e3   : > { %v1555_v38 = vmul.f32 %v1553_v36, %v1533_v29 }
0x11e5   : > { %v1557_v39 = vrot.slane %v1555_v38, 2 }
0x11e7   : > { %1558 = vrot.lane.b32.xlu2 %v1557_v39, %s2601_s2 }
0x1241   : > { %v1559_v42 = vpop.permute.xlu2 %1558 }
0x1242   : > { %2117 = vmatmul.msk.f32.vlgmr.msra.gmra.mxu3 %vm804_vm1, %v1559_v42 }
0x12c5   : > { %v1579_v45 = vpop.f32.mrf.mxu3 }
0x12c6   : > { %v1580_v46 = vadd.f32 %v1579_v45, %v3043_v35 }
0x12c8   : > { %v1584_v50 = vadd.f32 %v1582_v49, %v1580_v46 }
0x12ca   : > { %2289 = vtanh.f32 %v1584_v50 }
0x12d0   : > { %v2290_v3 = vpop.eup %2289 }
0x12d1   : > { %v1879_v40 = vrot.slane %v2290_v3, 6  ;;  %2118 = vmatmul.msk.f32.vlgmr.msra.gmra.mxu0 %vm804_vm1, %v2290_v3 }
0x12d3   : > { %v1890_v43 = vsel %vm1889_vm3, %v1888_v4, %v1879_v40  ;;  %vm1895_vm3 = vcmask 1044480  }
0x134e   : > { %v1606_v8 = vpop.f32.mrf.mxu0 }
0x134f   : > { %v1610_v48 = vrot.slane %v1606_v8, 5 }
0x1351   : > { %v1612_v51 = vadd.f32 %v1610_v48, %v2979_v61 }
0x1353   : > { %2291 = vtanh.f32 %v1612_v51  ;;  %v2119_v53 = vmul.f32 -1.442695, %v1612_v51 }
0x1355   : > { %2293 = vpow2.f32 %v2119_v53  ;;  %v1776_v53 = vrot.slane %v3045_v37, 4 }
0x1359   : > { %v2292_v10 = vpop.eup %2291 }
0x135a   : > { %1638 = vrot.lane.b32.xlu0 %v2292_v10, %s2600_s20 }
0x135b   : > { %v2294_v54 = vpop.eup %2293 }
0x135c   : > { %v1616_v55 = vadd.f32 1.0, %v2294_v54 }
0x135e   : > { %2295 = vrcp.f32 %v1616_v55  ;;  %v1628_v41 = vand.u32 2147483648, %v1616_v55  ;;  %vm1622_vm4 = vweird.f32 %v1616_v55  ;;  %v1626_v60 = vand.u32 2147483647, %v1616_v55 }
0x1360   : > { %v1629_v63 = vor.u32 1.1754944e-38, %v1628_v41  ;;  %vm1627_vm6 = vcmp.eq.f32.partialorder %v1626_v60, 8.507059e+37 }
0x1364   : > { %v2296_v56 = vpop.eup %2295 }
0x1365   : > { %v1618_v57 = vmul.f32 %v2296_v56, %v1616_v55  ;;  %vm1623_vm14 = vweird.f32 %v2296_v56 }
0x1366   : > { %vm1624_vm5 = vmor %vm1622_vm4, %vm1623_vm14  ;;  %vm1923_vm14 = vcmask 324608  }
0x1367   : > { %v1619_v44 = vsub.f32 1.0, %v1618_v57 }
0x1369   : > { %v1620_v59 = vmul.f32 %v2296_v56, %v1619_v44 }
0x136b   : > { %v1621_v58 = vadd.f32 %v2296_v56, %v1620_v59 }
0x136d   : > { %v1625_v62 = vsel %vm1624_vm5, %v2296_v56, %v1621_v58 }
0x136e   : > { %v1630_v1 = vsel %vm1627_vm6, %v1629_v63, %v1625_v62 }
0x136f   : > { %v1636_v6 = vmul.f32 %v1634_v5, %v1630_v1 }
0x13cc   : > { %v1639_v0 = vpop.permute.xlu0 %1638 }
0x13cd   : > { %v1641_v2 = vmul.f32 %v1639_v0, %v1630_v1 }
0x13cf   : > { %1643 = vrot.lane.b32.xlu1 %v1641_v2, %s2601_s2 }
0x1441   : > { %v1644_v7 = vpop.permute.xlu1 %1643 }
0x1442   : > { %v1646_v9 = vadd.f32 %v1644_v7, %v1636_v6 }
0x1444   : > { %2297 = vtanh.f32 %v1646_v9  ;;  %v1731_v49 = vrot.slane %v1646_v9, 7 }
0x144a   : > { %v2298_v11 = vpop.eup %2297 }
0x144b   : > { %1649 = vrot.lane.b32.xlu2 %v2298_v11, %s2600_s20 }
0x14a5   : > { %v1650_v12 = vpop.permute.xlu2 %1649 }
0x14a6   : > { %v1652_v24 = vmul.f32 %v1650_v12, %v1630_v1 }
0x14a8   : > { %v1654_v13 = vrot.slane %v1652_v24, 3 }
0x14aa   : > { %1655 = vrot.lane.b32.xlu0 %v1654_v13, %s2601_s2 }
0x151c   : > { %v1656_v14 = vpop.permute.xlu0 %1655 }
0x151d   : > { %2120 = vmatmul.msk.f32.vlgmr.msrb.gmra.mxu1 %vm804_vm1, %v1656_v14 }
0x159a   : > { %v1676_v15 = vpop.f32.mrf.mxu1 }
0x159b   : > { %v1677_v16 = vadd.f32 %v1676_v15, %v3043_v35 }
0x159d   : > { %v1681_v18 = vadd.f32 %v1679_v17, %v1677_v16 }
0x159f   : > { %2299 = vtanh.f32 %v1681_v18 }
0x15a5   : > { %v2300_v19 = vpop.eup %2299 }
0x15a6   : > { %v1881_v20 = vrot.slane %v2300_v19, 5  ;;  %2121 = vmatmul.msk.f32.vlgmr.msrb.gmra.mxu2 %vm804_vm1, %v2300_v19 }
0x15a8   : > { %v1892_v21 = vsel %vm1891_vm7, %v1890_v43, %v1881_v20 }
0x1629   : > { %v1703_v22 = vpop.f32.mrf.mxu2 }
0x162a   : > { %v1707_v23 = vrot.slane %v1703_v22, 4 }
0x162c   : > { %v1709_v25 = vadd.f32 %v1707_v23, %v2979_v61  ;;  %v766_v23 = vld [vmem:[#allocation13 + $0x18] sm:$0xff] }
0x162d   : > { %1915 = vmatpush.msra.mxu2 %v766_v23 }
0x162e   : > { %2301 = vtanh.f32 %v1709_v25  ;;  %v2122_v27 = vmul.f32 -1.442695, %v1709_v25  ;;  %v765_v25 = vld [vmem:[#allocation13 + $0x10] sm:$0xff] }
0x162f   : > { %1916 = vmatpush.msra.mxu2 %v765_v25 }
0x1630   : > { %2303 = vpow2.f32 %v2122_v27  ;;  %v763_v27 = vld [vmem:[#allocation13] sm:$0xff] }
0x1634   : > { %v2302_v26 = vpop.eup %2301 }
0x1635   : > { %1735 = vrot.lane.b32.xlu1 %v2302_v26, %s2600_s20  ;;  %v764_v26 = vld [vmem:[#allocation13 + $0x8] sm:$0xff] }
0x1636   : > { %v2304_v28 = vpop.eup %2303  ;;  %1917 = vmatpush.msra.mxu2 %v764_v26 }
0x1637   : > { %v1713_v29 = vadd.f32 1.0, %v2304_v28 }
0x1638   : > { %1918 = vmatpush.msra.mxu2 %v763_v27 }
0x1639   : > { %2305 = vrcp.f32 %v1713_v29  ;;  %v1725_v47 = vand.u32 2147483648, %v1713_v29  ;;  %vm1719_vm9 = vweird.f32 %v1713_v29  ;;  %v1723_v36 = vand.u32 2147483647, %v1713_v29 }
0x163b   : > { %v1726_v39 = vor.u32 1.1754944e-38, %v1725_v47  ;;  %vm1724_vm11 = vcmp.eq.f32.partialorder %v1723_v36, 8.507059e+37  ;;  %v2228_v47 = vld [vmem:[%s3136_s17] ss:$0 sm:$0xff] }
0x163f   : > { %v2306_v30 = vpop.eup %2305 }
0x1640   : > { %v1715_v31 = vmul.f32 %v2306_v30, %v1713_v29  ;;  %vm1720_vm8 = vweird.f32 %v2306_v30 }
0x1641   : > { %vm1721_vm10 = vmor %vm1719_vm9, %vm1720_vm8 }
0x1642   : > { %v1716_v32 = vsub.f32 1.0, %v1715_v31 }
0x1644   : > { %v1717_v33 = vmul.f32 %v2306_v30, %v1716_v32 }
0x1646   : > { %v1718_v34 = vadd.f32 %v2306_v30, %v1717_v33 }
0x1648   : > { %v1722_v38 = vsel %vm1721_vm10, %v2306_v30, %v1718_v34  ;;  %v1873_v30 = vrot.slane %v3045_v37, 5 }
0x1649   : > { %v1727_v45 = vsel %vm1724_vm11, %v1726_v39, %v1722_v38 }
0x164a   : > { %v1733_v50 = vmul.f32 %v1731_v49, %v1727_v45 }
0x16a7   : > { %v1736_v42 = vpop.permute.xlu1 %1735 }
0x16a8   : > { %v1738_v46 = vmul.f32 %v1736_v42, %v1727_v45 }
0x16aa   : > { %1740 = vrot.lane.b32.xlu2 %v1738_v46, %s2601_s2 }
0x1704   : > { %v1741_v52 = vpop.permute.xlu2 %1740 }
0x1705   : > { %v1743_v3 = vadd.f32 %v1741_v52, %v1733_v50 }
0x1707   : > { %2307 = vtanh.f32 %v1743_v3  ;;  %v1828_v14 = vrot.slane %v1743_v3, 7 }
0x170d   : > { %v2308_v40 = vpop.eup %2307 }
0x170e   : > { %1746 = vrot.lane.b32.xlu0 %v2308_v40, %s2600_s20 }
0x1780   : > { %v1747_v4 = vpop.permute.xlu0 %1746 }
0x1781   : > { %v1749_v43 = vmul.f32 %v1747_v4, %v1727_v45 }
0x1783   : > { %v1751_v8 = vrot.slane %v1749_v43, 4 }
0x1785   : > { %1752 = vrot.lane.b32.xlu1 %v1751_v8, %s2601_s2 }
0x17f7   : > { %v1753_v48 = vpop.permute.xlu1 %1752 }
0x17f8   : > { %2123 = vmatmul.msk.f32.vlgmr.msrb.gmra.mxu3 %vm804_vm1, %v1753_v48 }
0x187b   : > { %v1773_v51 = vpop.f32.mrf.mxu3 }
0x187c   : > { %v1774_v10 = vadd.f32 %v1773_v51, %v3043_v35 }
0x187e   : > { %v1778_v54 = vadd.f32 %v1776_v53, %v1774_v10 }
0x1880   : > { %2309 = vtanh.f32 %v1778_v54 }
0x1886   : > { %v2310_v55 = vpop.eup %2309 }
0x1887   : > { %v1883_v56 = vrot.slane %v2310_v55, 4  ;;  %2124 = vmatmul.msk.f32.vlgmr.msrb.gmra.mxu0 %vm804_vm1, %v2310_v55 }
0x1889   : > { %v1894_v57 = vsel %vm1893_vm12, %v1892_v21, %v1883_v56 }
0x1904   : > { %v1800_v44 = vpop.f32.mrf.mxu0 }
0x1905   : > { %v1804_v59 = vrot.slane %v1800_v44, 3 }
0x1907   : > { %v1806_v58 = vadd.f32 %v1804_v59, %v2979_v61 }
0x1909   : > { %2311 = vtanh.f32 %v1806_v58  ;;  %v2125_v60 = vmul.f32 -1.442695, %v1806_v58 }
0x190b   : > { %2313 = vpow2.f32 %v2125_v60 }
0x190f   : > { %v2312_v41 = vpop.eup %2311 }
0x1910   : > { %1832 = vrot.lane.b32.xlu2 %v2312_v41, %s2600_s20 }
0x1911   : > { %v2314_v62 = vpop.eup %2313 }
0x1912   : > { %v1810_v63 = vadd.f32 1.0, %v2314_v62 }
0x1914   : > { %2315 = vrcp.f32 %v1810_v63  ;;  %v1822_v7 = vand.u32 2147483648, %v1810_v63  ;;  %vm1816_vm15 = vweird.f32 %v1810_v63  ;;  %v1820_v9 = vand.u32 2147483647, %v1810_v63 }
0x1916   : > { %v1823_v11 = vor.u32 1.1754944e-38, %v1822_v7  ;;  %vm1821_vm2 = vcmp.eq.f32.partialorder %v1820_v9, 8.507059e+37 }
0x191a   : > { %v2316_v0 = vpop.eup %2315 }
0x191b   : > { %v1812_v1 = vmul.f32 %v2316_v0, %v1810_v63  ;;  %vm1817_vm13 = vweird.f32 %v2316_v0 }
0x191c   : > { %vm1818_vm0 = vmor %vm1816_vm15, %vm1817_vm13 }
0x191d   : > { %v1813_v2 = vsub.f32 1.0, %v1812_v1 }
0x191f   : > { %v1814_v5 = vmul.f32 %v2316_v0, %v1813_v2 }
0x1921   : > { %v1815_v6 = vadd.f32 %v2316_v0, %v1814_v5 }
0x1923   : > { %v1819_v61 = vsel %vm1818_vm0, %v2316_v0, %v1815_v6 }
0x1924   : > { %v1824_v24 = vsel %vm1821_vm2, %v1823_v11, %v1819_v61 }
0x1925   : > { %v1830_v15 = vmul.f32 %v1828_v14, %v1824_v24 }
0x196a   : > { %v1833_v12 = vpop.permute.xlu2 %1832 }
0x196b   : > { %v1835_v13 = vmul.f32 %v1833_v12, %v1824_v24 }
0x196d   : > { %1837 = vrot.lane.b32.xlu0 %v1835_v13, %s2601_s2 }
0x19df   : > { %v1838_v16 = vpop.permute.xlu0 %1837 }
0x19e0   : > { %v1840_v17 = vadd.f32 %v1838_v16, %v1830_v15 }
0x19e2   : > { %2317 = vtanh.f32 %v1840_v17 }
0x19e8   : > { %v2318_v18 = vpop.eup %2317 }
0x19e9   : > { %1843 = vrot.lane.b32.xlu1 %v2318_v18, %s2600_s20 }
0x1a5b   : > { %v1844_v19 = vpop.permute.xlu1 %1843 }
0x1a5c   : > { %v1846_v20 = vmul.f32 %v1844_v19, %v1824_v24 }
0x1a5e   : > { %v1848_v21 = vrot.slane %v1846_v20, 5 }
0x1a60   : > { %1849 = vrot.lane.b32.xlu2 %v1848_v21, %s2601_s2 }
0x1aba   : > { %v1850_v22 = vpop.permute.xlu2 %1849 }
0x1abb   : > { %2126 = vmatmul.msk.f32.vlgmr.msra.gmra.mxu1 %vm804_vm1, %v1850_v22 }
0x1b38   : > { %v1870_v28 = vpop.f32.mrf.mxu1 }
0x1b39   : > { %v1871_v29 = vadd.f32 %v1870_v28, %v3043_v35 }
0x1b3b   : > { %v1875_v31 = vadd.f32 %v1873_v30, %v1871_v29 }
0x1b3d   : > { %2319 = vtanh.f32 %v1875_v31 }
0x1b43   : > { %v2320_v32 = vpop.eup %2319 }
0x1b44   : > { %v1886_v33 = vrot.slane %v2320_v32, 3 }
0x1b46   : > { %v1896_v34 = vsel %vm1895_vm3, %v1894_v57, %v1886_v33 }
0x1b47   : > { %2127 = vmatmul.msk.f32.vlgmr.msra.gmra.mxu2 %vm804_vm1, %v1896_v34 }
0x1bca   : > { %v1920_v36 = vpop.f32.mrf.mxu2 }
0x1bcb   : > { %v1921_v35 = vadd.f32 %v2228_v47, %v1920_v36 }
0x1bcd   : > { %1924 = vst.msk [vmem:[%s714_s1] sm:$0x3f] %vm1923_vm14, %v1921_v35 }
0x1bce PF: > { %s33_s27 = sadd.s32 1, %s2587_s27  }
0x1bcf   : > { %p30_p7 = scmp.ge.s32.totalorder %s33_s27, 4  }
0x1bd1   :  { %32 = sbr.rel (!%p30_p7) target bundleno = 13 (0xd), region = 158 }
0x1bd6   :  { %1944 = vsyncpa [#allocation3], 1 }
0x1bd7   :  { %1946 = vsyncpa [#allocation3 + $0x1], 1 }
0x1bd8   :  { %1947 = vsyncpa [#allocation5], 1 }
0x1bd9   :  { %1948 = vsyncpa [#allocation8], 1 }
0x1bda   :  { %1949 = vsyncpa [#allocation11], 1 }
0x1bdb   :  { %1950 = vsyncpa [#allocation14], 1 }

</bundles_post_ra>
